<compile_context>
chip_gen: v5e
topology: v5e:2x2
jax: 0.10.0
libtpu: 0.0.40
codegen_flags: <defaults>
</compile_context>

<pallas_src>
import jax
import jax.numpy as jnp
from jax.experimental import pallas as pl
from jax.experimental.pallas import tpu as pltpu


H1, H2, H3 = 512, 256, 1
H3P = 128  # lane-dense padded width of the final layer


def _leaky_relu(x, slope=0.2):
    return jnp.where(x > 0, x, slope * x)


def _disc_kernel(pc_ref, lb_ref, w1pc_ref, w1lb_ref, b1_ref,
                 w2_ref, b2_ref, w3_ref, b3_ref, o_ref, acc_ref):
    """Grid = (batch tiles, K tiles of the layer-1 contraction).

    Each k step accumulates both halves of the (virtually concatenated) input
    against their W1 row blocks.  At the last k step: bias + LeakyReLU written
    in place into the accumulator, then the small VMEM-resident layers 2/3 and
    the sigmoid output store.
    """
    k = pl.program_id(1)

    @pl.when(k == 0)
    def _():
        acc_ref[...] = jnp.zeros_like(acc_ref)

    acc_ref[...] += (
        jnp.dot(pc_ref[...], w1pc_ref[...], preferred_element_type=jnp.float32)
        + jnp.dot(lb_ref[...], w1lb_ref[...], preferred_element_type=jnp.float32)
    )

    @pl.when(k == pl.num_programs(1) - 1)
    def _():
        # Layer-1 finalize in place (no fresh (TM, 512) f32 temp).
        acc_ref[...] = _leaky_relu(acc_ref[...] + b1_ref[...])

        h2 = jnp.dot(acc_ref[...].astype(jnp.bfloat16), w2_ref[...],
                     preferred_element_type=jnp.float32)
        h2 = _leaky_relu(h2 + b2_ref[...])                           # (TM, 256)

        h3 = jnp.dot(h2.astype(jnp.bfloat16), w3_ref[...],
                     preferred_element_type=jnp.float32) + b3_ref[...]  # (TM, 128)

        # Exact, numerically stable sigmoid (runs once per batch tile).
        z = jnp.exp(-jnp.abs(h3))
        o_ref[...] = jnp.where(h3 >= 0, 1.0, z) / (1.0 + z)


def _pick_k_tile(d):
    """Large K tiles keep grid K-steps few; fall back to the full contraction."""
    for c in (3072, 2048, 1536, 1024, 512, 256, 128):
        if d % c == 0:
            return c
    return d


def _pick_m_tile(b):
    """Big batch tiles cut W1 re-streams; keep >=2 tiles when possible so the
    "parallel" axis is non-degenerate on v7x's two TensorCores."""
    for c in (512, 256, 128):
        if b >= 2 * c:
            return c
    if b >= 128:
        return 128
    return max(16, 8 * ((b + 7) // 8))   # small batch: pad to >=16 sublanes


def prepare_params(params):
    """One-time (outside the per-call path) kernel-form parameters:
    bf16 matmul weights, f32 biases, final layer padded to 128 lanes."""
    w1, b1, w2, b2, w3, b3 = params
    return (
        w1.astype(jnp.bfloat16),
        b1.reshape(1, -1).astype(jnp.float32),
        w2.astype(jnp.bfloat16),
        b2.reshape(1, -1).astype(jnp.float32),
        jnp.pad(w3, ((0, 0), (0, H3P - w3.shape[1]))).astype(jnp.bfloat16),
        jnp.pad(b3.reshape(1, -1), ((0, 0), (0, H3P - b3.shape[1]))
                ).astype(jnp.float32),
    )


def discriminator_forward(point_cloud, labels, kparams):
    """Flatten inputs (views only) and run one fused tiled Pallas call."""
    w1, b1, w2, b2, w3p, b3p = kparams

    b = point_cloud.shape[0]
    pc = point_cloud.reshape(b, -1).astype(jnp.bfloat16)
    lb = labels.reshape(b, -1).astype(jnp.bfloat16)
    d_pc, d_lb = pc.shape[1], lb.shape[1]
    # Module spec: point_cloud and labels have identical shapes (2048*3 each).
    assert d_pc == d_lb, "point_cloud and labels must flatten to equal widths"
    assert w1.shape[0] == d_pc + d_lb, "W1 rows must match concatenated width"

    TM = _pick_m_tile(b)
    TK = _pick_k_tile(d_pc)
    # Guard the full-contraction fallback: a (TK, H1) bf16 W1 block must fit
    # comfortably in VMEM even when double-buffered.
    assert TK * H1 * 2 <= 8 * 1024 * 1024, "layer-1 K tile too large for VMEM"

    # Pad ragged batches instead of a single giant TM=B tile.
    b_pad = TM * pl.cdiv(b, TM)
    if b_pad != b:
        pad = ((0, b_pad - b), (0, 0))
        pc = jnp.pad(pc, pad)
        lb = jnp.pad(lb, pad)

    MB = b_pad // TM
    KB = d_pc // TK              # K blocks per half of W1

    const = dict(pipeline_mode=pl.Buffered(1))   # resident, never re-fetched

    out = pl.pallas_call(
        _disc_kernel,
        out_shape=jax.ShapeDtypeStruct((b_pad, H3P), jnp.float32),
        grid_spec=pltpu.PrefetchScalarGridSpec(
            num_scalar_prefetch=0,
            grid=(MB, KB),
            in_specs=[
                pl.BlockSpec((TM, TK), lambda i, k: (i, k)),         # pc tile
                pl.BlockSpec((TM, TK), lambda i, k: (i, k)),         # labels tile
                pl.BlockSpec((TK, H1), lambda i, k: (k, 0)),         # W1 rows (pc half)
                pl.BlockSpec((TK, H1), lambda i, k: (k + KB, 0)),    # W1 rows (label half)
                pl.BlockSpec((1, H1), lambda i, k: (0, 0), **const),   # b1
                pl.BlockSpec((H1, H2), lambda i, k: (0, 0), **const),  # W2 (resident)
                pl.BlockSpec((1, H2), lambda i, k: (0, 0), **const),   # b2
                pl.BlockSpec((H2, H3P), lambda i, k: (0, 0), **const), # W3 padded
                pl.BlockSpec((1, H3P), lambda i, k: (0, 0), **const),  # b3 padded
            ],
            out_specs=pl.BlockSpec((TM, H3P), lambda i, k: (i, 0)),
            scratch_shapes=[pltpu.VMEM((TM, H1), jnp.float32)],      # layer-1 acc
        ),
        compiler_params=pltpu.CompilerParams(
            dimension_semantics=("parallel", "arbitrary"),
            vmem_limit_bytes=48 << 20,   # safe under v7x's 64 MiB physical VMEM
        ),
    )(pc, lb, w1, w1, b1, w2, b2, w3p, b3p)

    return out[:b, :H3]                  # drop batch padding + 127 zero lanes


def init_params(key, input_dim, h1=H1, h2=H2, h3=H3):
    """Deterministic synthetic weights (PyTorch-like uniform fan-in init)."""
    ks = jax.random.split(key, 6)

    def lin(kw, kb, fan_in, fan_out):
        bound = 1.0 / jnp.sqrt(jnp.float32(fan_in))
        w = jax.random.uniform(kw, (fan_in, fan_out), jnp.float32, -bound, bound)
        b = jax.random.uniform(kb, (1, fan_out), jnp.float32, -bound, bound)
        return w, b

    w1, b1 = lin(ks[0], ks[1], input_dim, h1)
    w2, b2 = lin(ks[2], ks[3], h1, h2)
    w3, b3 = lin(ks[4], ks[5], h2, h3)
    return (w1, b1, w2, b2, w3, b3)


if __name__ == "__main__":
    key = jax.random.PRNGKey(0)
    k_pc, k_lb, k_p = jax.random.split(key, 3)

    # Small shapes consistent with the module (reference uses (B, 2048, 3) for
    # both inputs -> input_dim = 2048*3*2).  Scaled down: (B, 64, 3) each.
    B, N, C = 8, 64, 3
    point_cloud = jax.random.normal(k_pc, (B, N, C), jnp.float32)
    labels = jax.random.normal(k_lb, (B, N, C), jnp.float32)

    input_dim = N * C * 2
    params = init_params(k_p, input_dim)
    kparams = prepare_params(params)           # one-time bf16 cast / padding

    validity = jax.block_until_ready(
        discriminator_forward(point_cloud, labels, kparams))

    # Pure-JAX reference of the same math (weights/activations rounded to the
    # bf16 precision the kernel uses for its matmul operands).
    w1, b1, w2, b2, w3, b3 = params
    bf = lambda a: a.astype(jnp.bfloat16).astype(jnp.float32)
    d_in = jnp.concatenate(
        [bf(point_cloud.reshape(B, -1)), bf(labels.reshape(B, -1))], axis=-1)
    r1 = _leaky_relu(d_in @ bf(w1) + b1)
    r2 = _leaky_relu(bf(r1) @ bf(w2) + b2)
    ref = jax.nn.sigmoid(bf(r2) @ bf(w3) + b3)

    assert validity.shape == (B, 1)
    err = jnp.max(jnp.abs(validity - ref))
    assert jnp.allclose(validity, ref, atol=1e-2, rtol=1e-2), err

    print("KERNEL_OK")
</pallas_src>

<mosaic_0001>
module attributes {stable_mosaic.version = 11 : i64} {
  func.func @_disc_kernel(%arg0: i32, %arg1: i32, %arg2: memref<16x192xbf16, #tpu.memory_space<vmem>>, %arg3: memref<16x192xbf16, #tpu.memory_space<vmem>>, %arg4: memref<192x512xbf16, #tpu.memory_space<vmem>>, %arg5: memref<192x512xbf16, #tpu.memory_space<vmem>>, %arg6: memref<1x512xf32, #tpu.memory_space<vmem>>, %arg7: memref<512x256xbf16, #tpu.memory_space<vmem>>, %arg8: memref<1x256xf32, #tpu.memory_space<vmem>>, %arg9: memref<256x128xbf16, #tpu.memory_space<vmem>>, %arg10: memref<1x128xf32, #tpu.memory_space<vmem>>, %arg11: memref<16x128xf32, #tpu.memory_space<vmem>>, %arg12: memref<16x512xf32, #tpu.memory_space<vmem>>) attributes {dimension_semantics = [#tpu.dimension_semantics<parallel>, #tpu.dimension_semantics<arbitrary>], iteration_bounds = array<i64: 1, 1>, scalar_prefetch = 0 : i64, scratch_operands = 1 : i64, tpu.core_type = #tpu.core_type<tc>, window_params = [{transform_indices = @transform_0, window_bounds = array<i64: 16, 192>}, {transform_indices = @transform_1, window_bounds = array<i64: 16, 192>}, {transform_indices = @transform_2, window_bounds = array<i64: 192, 512>}, {transform_indices = @transform_3, window_bounds = array<i64: 192, 512>}, {pipeline_mode = #tpu.pipeline_mode<synchronous>, transform_indices = @transform_4, window_bounds = array<i64: 1, 512>}, {pipeline_mode = #tpu.pipeline_mode<synchronous>, transform_indices = @transform_5, window_bounds = array<i64: 512, 256>}, {pipeline_mode = #tpu.pipeline_mode<synchronous>, transform_indices = @transform_6, window_bounds = array<i64: 1, 256>}, {pipeline_mode = #tpu.pipeline_mode<synchronous>, transform_indices = @transform_7, window_bounds = array<i64: 256, 128>}, {pipeline_mode = #tpu.pipeline_mode<synchronous>, transform_indices = @transform_8, window_bounds = array<i64: 1, 128>}, {transform_indices = @transform_9, window_bounds = array<i64: 16, 128>}]} {
    %c0_i32 = arith.constant 0 : i32
    %0 = arith.cmpi eq, %arg1, %c0_i32 : i32
    %1 = arith.extui %0 : i1 to i32
    %c0_i32_0 = arith.constant 0 : i32
    %2 = arith.cmpi ne, %1, %c0_i32_0 : i32
    scf.if %2 {
      %cst_15 = arith.constant 0.000000e+00 : f32
      %16 = vector.broadcast %cst_15 : f32 to vector<16x512xf32>
      %c0_16 = arith.constant 0 : index
      %c0_17 = arith.constant 0 : index
      %17 = vector.load %arg12[%c0_16, %c0_17] : memref<16x512xf32, #tpu.memory_space<vmem>>, vector<16x512xf32>
      tpu.vector_store %arg12[%c0_16, %c0_17], %16 {strides = array<i32>} : memref<16x512xf32, #tpu.memory_space<vmem>>, vector<16x512xf32>,
    } else {
    }
    %c0 = arith.constant 0 : index
    %c0_1 = arith.constant 0 : index
    %3 = vector.load %arg12[%c0, %c0_1] : memref<16x512xf32, #tpu.memory_space<vmem>>, vector<16x512xf32>
    %c0_2 = arith.constant 0 : index
    %c0_3 = arith.constant 0 : index
    %4 = vector.load %arg2[%c0_2, %c0_3] : memref<16x192xbf16, #tpu.memory_space<vmem>>, vector<16x192xbf16>
    %c0_4 = arith.constant 0 : index
    %c0_5 = arith.constant 0 : index
    %5 = vector.load %arg4[%c0_4, %c0_5] : memref<192x512xbf16, #tpu.memory_space<vmem>>, vector<192x512xbf16>
    %cst = arith.constant dense<0.000000e+00> : vector<16x512xf32>
    %6 = tpu.matmul %4, %5, %cst {dimension_numbers = #tpu.dot_dimension_numbers<[1], [0], [0], [1], [0, 0, 1, 1], [], []>} : vector<16x192xbf16>, vector<192x512xbf16>, vector<16x512xf32> -> vector<16x512xf32>
    %c0_6 = arith.constant 0 : index
    %c0_7 = arith.constant 0 : index
    %7 = vector.load %arg3[%c0_6, %c0_7] : memref<16x192xbf16, #tpu.memory_space<vmem>>, vector<16x192xbf16>
    %c0_8 = arith.constant 0 : index
    %c0_9 = arith.constant 0 : index
    %8 = vector.load %arg5[%c0_8, %c0_9] : memref<192x512xbf16, #tpu.memory_space<vmem>>, vector<192x512xbf16>
    %cst_10 = arith.constant dense<0.000000e+00> : vector<16x512xf32>
    %9 = tpu.matmul %7, %8, %cst_10 {dimension_numbers = #tpu.dot_dimension_numbers<[1], [0], [0], [1], [0, 0, 1, 1], [], []>} : vector<16x192xbf16>, vector<192x512xbf16>, vector<16x512xf32> -> vector<16x512xf32>
    %10 = arith.addf %6, %9 : vector<16x512xf32>
    %11 = arith.addf %3, %10 : vector<16x512xf32>
    %c0_11 = arith.constant 0 : index
    %c0_12 = arith.constant 0 : index
    %12 = vector.load %arg12[%c0_11, %c0_12] : memref<16x512xf32, #tpu.memory_space<vmem>>, vector<16x512xf32>
    tpu.vector_store %arg12[%c0_11, %c0_12], %11 {strides = array<i32>} : memref<16x512xf32, #tpu.memory_space<vmem>>, vector<16x512xf32>,
    %c0_i32_13 = arith.constant 0 : i32
    %13 = arith.cmpi eq, %arg1, %c0_i32_13 : i32
    %14 = arith.extui %13 : i1 to i32
    %c0_i32_14 = arith.constant 0 : i32
    %15 = arith.cmpi ne, %14, %c0_i32_14 : i32
    scf.if %15 {
      %c0_15 = arith.constant 0 : index
      %c0_16 = arith.constant 0 : index
      %16 = vector.load %arg12[%c0_15, %c0_16] : memref<16x512xf32, #tpu.memory_space<vmem>>, vector<16x512xf32>
      %c0_17 = arith.constant 0 : index
      %c0_18 = arith.constant 0 : index
      %17 = vector.load %arg6[%c0_17, %c0_18] : memref<1x512xf32, #tpu.memory_space<vmem>>, vector<1x512xf32>
      %18 = vector.broadcast %17 : vector<1x512xf32> to vector<16x512xf32>
      %19 = arith.addf %16, %18 : vector<16x512xf32>
      %cst_19 = arith.constant 0.000000e+00 : f32
      %20 = vector.broadcast %cst_19 : f32 to vector<16x512xf32>
      %21 = arith.cmpf ogt, %19, %20 : vector<16x512xf32>
      %cst_20 = arith.constant 2.000000e-01 : f32
      %22 = vector.broadcast %cst_20 : f32 to vector<16x512xf32>
      %23 = arith.mulf %22, %19 : vector<16x512xf32>
      %24 = arith.select %21, %19, %23 : vector<16x512xi1>, vector<16x512xf32>
      %c0_21 = arith.constant 0 : index
      %c0_22 = arith.constant 0 : index
      %25 = vector.load %arg12[%c0_21, %c0_22] : memref<16x512xf32, #tpu.memory_space<vmem>>, vector<16x512xf32>
      tpu.vector_store %arg12[%c0_21, %c0_22], %24 {strides = array<i32>} : memref<16x512xf32, #tpu.memory_space<vmem>>, vector<16x512xf32>,
      %c0_23 = arith.constant 0 : index
      %c0_24 = arith.constant 0 : index
      %26 = vector.load %arg12[%c0_23, %c0_24] : memref<16x512xf32, #tpu.memory_space<vmem>>, vector<16x512xf32>
      %27 = arith.truncf %26 : vector<16x512xf32> to vector<16x512xbf16>
      %c0_25 = arith.constant 0 : index
      %c0_26 = arith.constant 0 : index
      %28 = vector.load %arg7[%c0_25, %c0_26] : memref<512x256xbf16, #tpu.memory_space<vmem>>, vector<512x256xbf16>
      %cst_27 = arith.constant dense<0.000000e+00> : vector<16x256xf32>
      %29 = tpu.matmul %27, %28, %cst_27 {dimension_numbers = #tpu.dot_dimension_numbers<[1], [0], [0], [1], [0, 0, 1, 1], [], []>} : vector<16x512xbf16>, vector<512x256xbf16>, vector<16x256xf32> -> vector<16x256xf32>
      %c0_28 = arith.constant 0 : index
      %c0_29 = arith.constant 0 : index
      %30 = vector.load %arg8[%c0_28, %c0_29] : memref<1x256xf32, #tpu.memory_space<vmem>>, vector<1x256xf32>
      %31 = vector.broadcast %30 : vector<1x256xf32> to vector<16x256xf32>
      %32 = arith.addf %29, %31 : vector<16x256xf32>
      %cst_30 = arith.constant 0.000000e+00 : f32
      %33 = vector.broadcast %cst_30 : f32 to vector<16x256xf32>
      %34 = arith.cmpf ogt, %32, %33 : vector<16x256xf32>
      %cst_31 = arith.constant 2.000000e-01 : f32
      %35 = vector.broadcast %cst_31 : f32 to vector<16x256xf32>
      %36 = arith.mulf %35, %32 : vector<16x256xf32>
      %37 = arith.select %34, %32, %36 : vector<16x256xi1>, vector<16x256xf32>
      %38 = arith.truncf %37 : vector<16x256xf32> to vector<16x256xbf16>
      %c0_32 = arith.constant 0 : index
      %c0_33 = arith.constant 0 : index
      %39 = vector.load %arg9[%c0_32, %c0_33] : memref<256x128xbf16, #tpu.memory_space<vmem>>, vector<256x128xbf16>
      %cst_34 = arith.constant dense<0.000000e+00> : vector<16x128xf32>
      %40 = tpu.matmul %38, %39, %cst_34 {dimension_numbers = #tpu.dot_dimension_numbers<[1], [0], [0], [1], [0, 0, 1, 1], [], []>} : vector<16x256xbf16>, vector<256x128xbf16>, vector<16x128xf32> -> vector<16x128xf32>
      %c0_35 = arith.constant 0 : index
      %c0_36 = arith.constant 0 : index
      %41 = vector.load %arg10[%c0_35, %c0_36] : memref<1x128xf32, #tpu.memory_space<vmem>>, vector<1x128xf32>
      %42 = vector.broadcast %41 : vector<1x128xf32> to vector<16x128xf32>
      %43 = arith.addf %40, %42 : vector<16x128xf32>
      %44 = math.absf %43 : vector<16x128xf32>
      %cst_37 = arith.constant 0.000000e+00 : f32
      %45 = vector.broadcast %cst_37 : f32 to vector<16x128xf32>
      %46 = arith.subf %45, %44 : vector<16x128xf32>
      %47 = math.exp %46 : vector<16x128xf32>
      %cst_38 = arith.constant 0.000000e+00 : f32
      %48 = vector.broadcast %cst_38 : f32 to vector<16x128xf32>
      %49 = arith.cmpf oge, %43, %48 : vector<16x128xf32>
      %cst_39 = arith.constant 1.000000e+00 : f32
      %50 = vector.broadcast %cst_39 : f32 to vector<16x128xf32>
      %51 = arith.select %49, %50, %47 : vector<16x128xi1>, vector<16x128xf32>
      %cst_40 = arith.constant 1.000000e+00 : f32
      %52 = vector.broadcast %cst_40 : f32 to vector<16x128xf32>
      %53 = arith.addf %52, %47 : vector<16x128xf32>
      %54 = arith.divf %51, %53 : vector<16x128xf32>
      %c0_41 = arith.constant 0 : index
      %c0_42 = arith.constant 0 : index
      %55 = vector.load %arg11[%c0_41, %c0_42] : memref<16x128xf32, #tpu.memory_space<vmem>>, vector<16x128xf32>
      tpu.vector_store %arg11[%c0_41, %c0_42], %54 {strides = array<i32>} : memref<16x128xf32, #tpu.memory_space<vmem>>, vector<16x128xf32>,
    } else {
    }
    return
  }
  func.func @transform_0(%arg0: i32, %arg1: i32) -> (i32, i32) {
    %c0_i32 = arith.constant 0 : i32
    return %arg0, %arg1 : i32, i32
  }
  func.func @transform_1(%arg0: i32, %arg1: i32) -> (i32, i32) {
    %c0_i32 = arith.constant 0 : i32
    return %arg0, %arg1 : i32, i32
  }
  func.func @transform_2(%arg0: i32, %arg1: i32) -> (i32, i32) {
    %c0_i32 = arith.constant 0 : i32
    %c0_i32_0 = arith.constant 0 : i32
    return %arg1, %c0_i32 : i32, i32
  }
  func.func @transform_3(%arg0: i32, %arg1: i32) -> (i32, i32) {
    %c1_i32 = arith.constant 1 : i32
    %0 = arith.addi %arg1, %c1_i32 : i32
    %c0_i32 = arith.constant 0 : i32
    %c0_i32_0 = arith.constant 0 : i32
    return %0, %c0_i32 : i32, i32
  }
  func.func @transform_4(%arg0: i32, %arg1: i32) -> (i32, i32) {
    %c0_i32 = arith.constant 0 : i32
    %c0_i32_0 = arith.constant 0 : i32
    %c0_i32_1 = arith.constant 0 : i32
    return %c0_i32, %c0_i32_0 : i32, i32
  }
  func.func @transform_5(%arg0: i32, %arg1: i32) -> (i32, i32) {
    %c0_i32 = arith.constant 0 : i32
    %c0_i32_0 = arith.constant 0 : i32
    %c0_i32_1 = arith.constant 0 : i32
    return %c0_i32, %c0_i32_0 : i32, i32
  }
  func.func @transform_6(%arg0: i32, %arg1: i32) -> (i32, i32) {
    %c0_i32 = arith.constant 0 : i32
    %c0_i32_0 = arith.constant 0 : i32
    %c0_i32_1 = arith.constant 0 : i32
    return %c0_i32, %c0_i32_0 : i32, i32
  }
  func.func @transform_7(%arg0: i32, %arg1: i32) -> (i32, i32) {
    %c0_i32 = arith.constant 0 : i32
    %c0_i32_0 = arith.constant 0 : i32
    %c0_i32_1 = arith.constant 0 : i32
    return %c0_i32, %c0_i32_0 : i32, i32
  }
  func.func @transform_8(%arg0: i32, %arg1: i32) -> (i32, i32) {
    %c0_i32 = arith.constant 0 : i32
    %c0_i32_0 = arith.constant 0 : i32
    %c0_i32_1 = arith.constant 0 : i32
    return %c0_i32, %c0_i32_0 : i32, i32
  }
  func.func @transform_9(%arg0: i32, %arg1: i32) -> (i32, i32) {
    %c0_i32 = arith.constant 0 : i32
    %c0_i32_0 = arith.constant 0 : i32
    return %arg0, %c0_i32 : i32, i32
  }
}

</mosaic_0001>

<bundles_post_ra>
// kernel: tpu_custom_call.1
= control target key start
LH: loop header
LB: loop body
LE: loop exit
PB: predicated region body
PF: predicated region fallthrough
CT: control target
= control target key end

     0   :  { %14 = vsyncpa [#allocation4], 0  ;;  %s3159_s0 = inlined_call_operand.hbm [shape: bf16[16,192], index: 0, kind: input, shape index: {}]   ;;  %s3160_s1 = inlined_call_operand.hbm [shape: bf16[16,192], index: 1, kind: input, shape index: {}]   ;;  %s3161_s2 = inlined_call_operand.hbm [shape: bf16[384,512], index: 2, kind: input, shape index: {}]   ;;  %s3162_s3 = inlined_call_operand.hbm [shape: bf16[384,512], index: 3, kind: input, shape index: {}]   ;;  %s3163_s4 = inlined_call_operand.hbm [shape: f32[1,512], index: 4, kind: input, shape index: {}]   ;;  %s3164_s5 = inlined_call_operand.hbm [shape: bf16[512,256], index: 5, kind: input, shape index: {}]   ;;  %s3165_s6 = inlined_call_operand.vmem [shape: f32[1,256], index: 6, kind: input, shape index: {}]   ;;  %s3166_s7 = inlined_call_operand.hbm [shape: bf16[256,128], index: 7, kind: input, shape index: {}]   ;;  %s3167_s8 = inlined_call_operand.vmem [shape: f32[1,128], index: 8, kind: input, shape index: {}]   ;;  %s3168_s9 = inlined_call_operand.hbm [shape: f32[16,128], index: 9, kind: output, shape index: {}]  }
   0x1   :  { %15 = vsyncpa [#allocation7], 0 }
   0x2   :  { %16 = vsyncpa [#allocation10], 0 }
   0x3   :  { %17 = vsyncpa [#allocation13], 0 }
   0x4   :  { %18 = vsyncpa [#allocation5], 0  ;;  %s36_s11 = sshll.u32 %s3160_s1, 4  ;;  %s2964_s12 = smov [#allocation6]   ;;  %s37_s11 = int_to_ptr.hbm [resolvable:$true] %s36_s11 }
   0x5   :  { %s38_s13 = sshll.u32 %s2964_s12, 4  ;;  %s2965_s14 = smov 128   ;;  %s39_s13 = int_to_ptr.vmem [resolvable:$true] %s38_s13 }
   0x6   :  { %s2966_s15 = smov 8   ;;  %s1830_s18 = scalar_lea.hbm %s3162_s3, 384 }
   0x7   :  { %44 = dma.hbm_to_vmem [thread:$0]  %s37_s11, 256, %s39_s13, [#allocation7], %s2965_s14, %s2965_s14, %s2966_s15  }
   0x8   :  { %s67_s19 = sshll.u32 %s1830_s18, 4  ;;  %s2967_s20 = smov [#allocation9]   ;;  %s68_s19 = int_to_ptr.hbm [resolvable:$true] %s67_s19 }
   0x9   :  { %s69_s21 = sshll.u32 %s2967_s20, 4  ;;  %s91_s23 = sshll.u32 %s3164_s5, 4  ;;  %s70_s21 = int_to_ptr.vmem [resolvable:$true] %s69_s21  ;;  %s92_s23 = int_to_ptr.hbm [resolvable:$true] %s91_s23 }
   0xa   :  { %s2968_s24 = smov 256   ;;  %s2969_s25 = smov 16  }
   0xb   :  { %75 = dma.hbm_to_vmem [thread:$0]  %s68_s19, 6144, %s70_s21, [#allocation10], %s2968_s24, %s2968_s24, %s2969_s25  }
   0xc   :  { %s2970_s26 = smov [#allocation12]   ;;  %s23_s30 = sshll.u32 %s3159_s0, 4  ;;  %s24_s30 = int_to_ptr.hbm [resolvable:$true] %s23_s30 }
   0xd   :  { %s93_s27 = sshll.u32 %s2970_s26, 4  ;;  %s49_s5 = sshll.u32 %s3161_s2, 4  ;;  %s94_s27 = int_to_ptr.vmem [resolvable:$true] %s93_s27  ;;  %s50_s5 = int_to_ptr.hbm [resolvable:$true] %s49_s5 }
   0xe   :  { %99 = dma.hbm_to_vmem [thread:$0]  %s92_s23, 8192, %s94_s27, [#allocation13], %s2965_s14, %s2965_s14, %s2966_s15  }
   0xf   :  { %s2971_s11 = smov [#allocation3]   ;;  %s2972_s13 = smov [#allocation8]  }
  0x10   :  { %s25_s12 = sshll.u32 %s2971_s11, 4  ;;  %s51_s0 = sshll.u32 %s2972_s13, 4  ;;  %s26_s12 = int_to_ptr.vmem [resolvable:$true] %s25_s12  ;;  %s52_s0 = int_to_ptr.vmem [resolvable:$true] %s51_s0 }
  0x11   :  { %31 = dma.hbm_to_vmem [thread:$0]  %s24_s30, 256, %s26_s12, [#allocation4], %s2965_s14, %s2965_s14, %s2966_s15  }
  0x12   :  { %s81_s18 = sshll.u32 %s3163_s4, 4  ;;  %s106_s2 = sshll.u32 %s3166_s7, 4  ;;  %s82_s18 = int_to_ptr.hbm [resolvable:$true] %s81_s18  ;;  %s107_s2 = int_to_ptr.hbm [resolvable:$true] %s106_s2 }
  0x13   :  { %57 = dma.hbm_to_vmem [thread:$0]  %s50_s5, 6144, %s52_s0, [#allocation7], %s2968_s24, %s2968_s24, %s2969_s25  }
  0x14   :  { %s2973_s21 = smov [#allocation11]   ;;  %s2974_s22 = smov [#allocation14]  }
  0x15   :  { %s83_s1 = sshll.u32 %s2973_s21, 4  ;;  %s108_s23 = sshll.u32 %s2974_s22, 4  ;;  %s84_s1 = int_to_ptr.vmem [resolvable:$true] %s83_s1  ;;  %s109_s23 = int_to_ptr.vmem [resolvable:$true] %s108_s23 }
  0x16   :  { %86 = dma.hbm_to_vmem [thread:$0]  %s82_s18, 64, %s84_s1, [#allocation10]  }
  0x17   :  { %s2975_s26 = smov 64   ;;  %s2976_s27 = smov 4  }
  0x18   :  { %114 = dma.hbm_to_vmem [thread:$0]  %s107_s2, 2048, %s109_s23, [#allocation13], %s2975_s26, %s2975_s26, %s2976_s27  }
  0x19   :  { %2954 = dma.done.wait [#allocation4], 256  }
  0x1a   :  { %2955 = vsyncadd [#allocation4], 4294967040 }
  0x1b   :  { %2956 = dma.done.wait [#allocation7], 6400  }
  0x1c   :  { %2957 = vsyncadd [#allocation7], 4294960896 }
  0x1d   :  { %2958 = dma.done.wait [#allocation10], 6208  }
  0x1e   :  { %2959 = vsyncadd [#allocation10], 4294961088 }
  0x1f   :  { %2960 = dma.done.wait [#allocation13], 10240  }
  0x20   :  { %2961 = vsyncadd [#allocation13], 4294957056  ;;  %v1953_v0 = vld [vmem:[#allocation9 + $0xe0] sm:$0xf]  ;;  %v2641_v1 = vld [vmem:[#allocation9 + $0xec] sm:$0xf0] }
  0x21   :  { %v2017_v2 = vld [vmem:[#allocation9 + $0x160] sm:$0xf]  ;;  %v1954_v3 = vor.u32 %v2641_v1, %v1953_v0  ;;  %v2657_v4 = vld [vmem:[#allocation9 + $0x16c] sm:$0xf0]  ;;  %v2655_v5 = vld [vmem:[#allocation9 + $0x164] sm:$0xf] }
  0x22   :  { %v2019_v6 = vld [vmem:[#allocation9 + $0x170] sm:$0xf0]  ;;  %v2018_v7 = vor.u32 %v2657_v4, %v2017_v2  ;;  %v1961_v9 = vld [vmem:[#allocation9 + $0xe8] sm:$0xf]  ;;  %v2642_v10 = vld [vmem:[#allocation9 + $0xf4] sm:$0xf0] }
  0x23   :  { %v2022_v8 = vor.u32 %v2655_v5, %v2019_v6  ;;  %v1937_v11 = vld [vmem:[#allocation9 + $0xc0] sm:$0xf]  ;;  %521 = vmatpush.bf16.msra.mxu0 %v1954_v3  ;;  %v1962_v12 = vor.u32 %v2642_v10, %v1961_v9  ;;  %v2637_v13 = vld [vmem:[#allocation9 + $0xcc] sm:$0xf0]  ;;  %v2651_v18 = vld [vmem:[#allocation9 + $0x144] sm:$0xf] }
  0x24   :  { %v2001_v14 = vld [vmem:[#allocation9 + $0x140] sm:$0xf]  ;;  %v2653_v15 = vld [vmem:[#allocation9 + $0x14c] sm:$0xf0]  ;;  %539 = vmatpush.bf16.msra.mxu2 %v2018_v7  ;;  %v1938_v16 = vor.u32 %v2637_v13, %v1937_v11  ;;  %v2003_v19 = vld [vmem:[#allocation9 + $0x150] sm:$0xf0] }
  0x25   :  { %567 = vmatpush.bf16.msra.mxu3 %v2022_v8  ;;  %v2002_v17 = vor.u32 %v2653_v15, %v2001_v14  ;;  %v1945_v20 = vld [vmem:[#allocation9 + $0xc8] sm:$0xf]  ;;  %577 = vmatpush.bf16.msra.mxu1 %v1962_v12  ;;  %v2006_v21 = vor.u32 %v2651_v18, %v2003_v19  ;;  %v2638_v22 = vld [vmem:[#allocation9 + $0xd4] sm:$0xf0]  ;;  %v1921_v23 = vld [vmem:[#allocation9 + $0xa0] sm:$0xf] }
  0x26   :  { %v2633_v24 = vld [vmem:[#allocation9 + $0xac] sm:$0xf0]  ;;  %v1946_v25 = vor.u32 %v2638_v22, %v1945_v20  ;;  %v1985_v26 = vld [vmem:[#allocation9 + $0x120] sm:$0xf]  ;;  %v2647_v28 = vld [vmem:[#allocation9 + $0x124] sm:$0xf] }
  0x27   :  { %v2649_v27 = vld [vmem:[#allocation9 + $0x12c] sm:$0xf0]  ;;  %522 = vmatpush.bf16.msra.mxu0 %v1938_v16  ;;  %v1922_v29 = vor.u32 %v2633_v24, %v1921_v23  ;;  %v1987_v30 = vld [vmem:[#allocation9 + $0x130] sm:$0xf0]  ;;  %v1929_v31 = vld [vmem:[#allocation9 + $0xa8] sm:$0xf] }
  0x28   :  { %v2634_v32 = vld [vmem:[#allocation9 + $0xb4] sm:$0xf0]  ;;  %540 = vmatpush.bf16.msra.mxu2 %v2002_v17  ;;  %v1986_v33 = vor.u32 %v2649_v27, %v1985_v26  ;;  %v1990_v34 = vor.u32 %v2647_v28, %v1987_v30  ;;  %v1905_v35 = vld [vmem:[#allocation9 + $0x80] sm:$0xf]  ;;  %v2629_v36 = vld [vmem:[#allocation9 + $0x8c] sm:$0xf0] }
  0x29   :  { %568 = vmatpush.bf16.msra.mxu3 %v2006_v21  ;;  %v1969_v37 = vld [vmem:[#allocation9 + $0x100] sm:$0xf]  ;;  %578 = vmatpush.bf16.msra.mxu1 %v1946_v25  ;;  %v1930_v38 = vor.u32 %v2634_v32, %v1929_v31  ;;  %v2645_v39 = vld [vmem:[#allocation9 + $0x10c] sm:$0xf0]  ;;  %v2643_v40 = vld [vmem:[#allocation9 + $0x104] sm:$0xf]  ;;  %v1906_v45 = vor.u32 %v2629_v36, %v1905_v35 }
  0x2a   :  { %v1971_v41 = vld [vmem:[#allocation9 + $0x110] sm:$0xf0]  ;;  %v1913_v42 = vld [vmem:[#allocation9 + $0x88] sm:$0xf]  ;;  %v2630_v43 = vld [vmem:[#allocation9 + $0x94] sm:$0xf0]  ;;  %v1970_v49 = vor.u32 %v2645_v39, %v1969_v37 }
  0x2b   :  { %v2639_v44 = vld [vmem:[#allocation9 + $0xe4] sm:$0xf]  ;;  %523 = vmatpush.bf16.msra.mxu0 %v1922_v29  ;;  %v1955_v46 = vld [vmem:[#allocation9 + $0xf0] sm:$0xf0]  ;;  %v2025_v47 = vld [vmem:[#allocation9 + $0x168] sm:$0xf]  ;;  %v1974_v50 = vor.u32 %v2643_v40, %v1971_v41  ;;  %v1914_v53 = vor.u32 %v2630_v43, %v1913_v42 }
  0x2c   :  { %v2658_v48 = vld [vmem:[#allocation9 + $0x174] sm:$0xf0]  ;;  %541 = vmatpush.bf16.msra.mxu2 %v1986_v33  ;;  %v1889_v51 = vld [vmem:[#allocation9 + $0x60] sm:$0xf]  ;;  %v2625_v52 = vld [vmem:[#allocation9 + $0x6c] sm:$0xf0]  ;;  %v1958_v54 = vor.u32 %v2639_v44, %v1955_v46 }
  0x2d   :  { %569 = vmatpush.bf16.msra.mxu3 %v1990_v34  ;;  %579 = vmatpush.bf16.msra.mxu1 %v1930_v38  ;;  %v1897_v55 = vld [vmem:[#allocation9 + $0x68] sm:$0xf]  ;;  %v2026_v56 = vor.u32 %v2658_v48, %v2025_v47  ;;  %v2626_v57 = vld [vmem:[#allocation9 + $0x74] sm:$0xf0]  ;;  %v2635_v58 = vld [vmem:[#allocation9 + $0xc4] sm:$0xf]  ;;  %v1890_v60 = vor.u32 %v2625_v52, %v1889_v51 }
  0x2e   :  { %v1939_v59 = vld [vmem:[#allocation9 + $0xd0] sm:$0xf0]  ;;  %v2009_v61 = vld [vmem:[#allocation9 + $0x148] sm:$0xf]  ;;  %v2654_v62 = vld [vmem:[#allocation9 + $0x154] sm:$0xf0]  ;;  %v1898_v1 = vor.u32 %v2626_v57, %v1897_v55 }
  0x2f   :  { %524 = vmatpush.bf16.msra.mxu0 %v1906_v45  ;;  %v1873_v63 = vld [vmem:[#allocation9 + $0x40] sm:$0xf]  ;;  %v2621_v0 = vld [vmem:[#allocation9 + $0x4c] sm:$0xf0]  ;;  %v1942_v2 = vor.u32 %v2635_v58, %v1939_v59  ;;  %v1881_v3 = vld [vmem:[#allocation9 + $0x48] sm:$0xf]  ;;  %v2010_v5 = vor.u32 %v2654_v62, %v2009_v61 }
  0x30   :  { %542 = vmatpush.bf16.msra.mxu2 %v1970_v49  ;;  %v2622_v4 = vld [vmem:[#allocation9 + $0x54] sm:$0xf0]  ;;  %v2631_v6 = vld [vmem:[#allocation9 + $0xa4] sm:$0xf]  ;;  %v1923_v7 = vld [vmem:[#allocation9 + $0xb0] sm:$0xf0]  ;;  %v1874_v9 = vor.u32 %v2621_v0, %v1873_v63 }
  0x31   :  { %570 = vmatpush.bf16.msra.mxu3 %v1974_v50  ;;  %580 = vmatpush.bf16.msra.mxu1 %v1914_v53  ;;  %v1993_v8 = vld [vmem:[#allocation9 + $0x128] sm:$0xf]  ;;  %v2650_v10 = vld [vmem:[#allocation9 + $0x134] sm:$0xf0]  ;;  %v2609_v11 = vld [vmem:[#allocation6 + $0x4] sm:$0xf]  ;;  %v1882_v16 = vor.u32 %v2622_v4, %v1881_v3  ;;  %v1926_v17 = vor.u32 %v2631_v6, %v1923_v7 }
  0x32   :  { %v1835_v12 = vld [vmem:[#allocation6 + $0x8] sm:$0xf0]  ;;  %v1857_v13 = vld [vmem:[#allocation9 + $0x20] sm:$0xf]  ;;  %v2617_v14 = vld [vmem:[#allocation9 + $0x2c] sm:$0xf0]  ;;  %v1994_v19 = vor.u32 %v2650_v10, %v1993_v8 }
  0x33   :  { %525 = vmatpush.bf16.msra.mxu0 %v1890_v60  ;;  %v3058_v15 = vor.u32 %v2609_v11, %v1835_v12  ;;  %vm517_vm0 = vcmask 523264   ;;  %v1865_v18 = vld [vmem:[#allocation9 + $0x28] sm:$0xf]  ;;  %v2618_v20 = vld [vmem:[#allocation9 + $0x34] sm:$0xf0]  ;;  %v1858_v23 = vor.u32 %v2617_v14, %v1857_v13  ;;  %s1814_s30 = sshll.u32 %s3168_s9, 4  ;;  %s1815_s30 = int_to_ptr.hbm [resolvable:$true] %s1814_s30 }
  0x34   :  { %549 = vmatpush.bf16.msrb.mxu2 %v1958_v54  ;;  %v2627_v21 = vld [vmem:[#allocation9 + $0x84] sm:$0xf]  ;;  %v1907_v22 = vld [vmem:[#allocation9 + $0x90] sm:$0xf0]  ;;  %v1977_v24 = vld [vmem:[#allocation9 + $0x108] sm:$0xf]  ;;  %v1866_v30 = vor.u32 %v2618_v20, %v1865_v18 }
  0x35   :  { %595 = vmatpush.bf16.msrb.mxu3 %v2026_v56  ;;  %581 = vmatpush.bf16.msra.mxu1 %v1898_v1  ;;  %v2646_v25 = vld [vmem:[#allocation9 + $0x114] sm:$0xf0]  ;;  %v2157_v26 = vld [vmem:[#allocation8 + $0xe0] sm:$0xf]  ;;  %v2591_v27 = vld [vmem:[#allocation8 + $0xec] sm:$0xf0]  ;;  %v1910_v31 = vor.u32 %v2627_v21, %v1907_v22 }
  0x36   :  { %2031 = vmatmul.msk.bf16.vlgmr.msra.gmra.mxu2 %vm517_vm0, %v3058_v15  ;;  %2032 = vmatmul.msk.bf16.vlgmr.msra.gmra.mxu3 %vm517_vm0, %v3058_v15  ;;  %v1841_v28 = vld [vmem:[#allocation9] sm:$0xf]  ;;  %v2613_v29 = vld [vmem:[#allocation9 + $0xc] sm:$0xf0]  ;;  %v1849_v32 = vld [vmem:[#allocation9 + $0x8] sm:$0xf]  ;;  %v1978_v35 = vor.u32 %v2646_v25, %v1977_v24  ;;  %v2158_v39 = vor.u32 %v2591_v27, %v2157_v26 }
  0x37   :  { %526 = vmatpush.bf16.msra.mxu0 %v1874_v9  ;;  %v2640_v33 = vld [vmem:[#allocation9 + $0xec] sm:$0xf]  ;;  %v1963_v34 = vld [vmem:[#allocation9 + $0xf8] sm:$0xf0]  ;;  %v2614_v36 = vld [vmem:[#allocation9 + $0x14] sm:$0xf0]  ;;  %v1842_v40 = vor.u32 %v2613_v29, %v1841_v28 }
  0x38   :  { %550 = vmatpush.bf16.msrb.mxu2 %v1942_v2  ;;  %v2623_v37 = vld [vmem:[#allocation9 + $0x64] sm:$0xf]  ;;  %v1891_v38 = vld [vmem:[#allocation9 + $0x70] sm:$0xf0]  ;;  %v2221_v41 = vld [vmem:[#allocation8 + $0x160] sm:$0xf]  ;;  %v1966_v44 = vor.u32 %v2640_v33, %v1963_v34  ;;  %v1850_v48 = vor.u32 %v2614_v36, %v1849_v32 }
  0x39   :  { %596 = vmatpush.bf16.msrb.mxu3 %v2010_v5  ;;  %582 = vmatpush.bf16.msra.mxu1 %v1882_v16  ;;  %v2607_v42 = vld [vmem:[#allocation8 + $0x16c] sm:$0xf0]  ;;  %v2141_v43 = vld [vmem:[#allocation8 + $0xc0] sm:$0xf]  ;;  %v2610_v47 = vld [vmem:[#allocation6 + $0x4] sm:$0xf0]  ;;  %v1894_v49 = vor.u32 %v2623_v37, %v1891_v38 }
  0x3a   :  { %v2587_v45 = vld [vmem:[#allocation8 + $0xcc] sm:$0xf0]  ;;  %v2636_v50 = vld [vmem:[#allocation9 + $0xcc] sm:$0xf]  ;;  %v1947_v51 = vld [vmem:[#allocation9 + $0xd8] sm:$0xf0]  ;;  %v2222_v52 = vor.u32 %v2607_v42, %v2221_v41 }
  0x3b   :  { %527 = vmatpush.bf16.msra.mxu0 %v1858_v23  ;;  %v1833_v46 = vld [vmem:[#allocation6] sm:$0xf]  ;;  %v2619_v53 = vld [vmem:[#allocation9 + $0x44] sm:$0xf]  ;;  %v1875_v54 = vld [vmem:[#allocation9 + $0x50] sm:$0xf0]  ;;  %v2142_v56 = vor.u32 %v2587_v45, %v2141_v43  ;;  %v1950_v59 = vor.u32 %v2636_v50, %v1947_v51 }
  0x3c   :  { %551 = vmatpush.bf16.msrb.mxu2 %v1926_v17  ;;  %v3064_v55 = vor.u32 %v2610_v47, %v1833_v46  ;;  %v2205_v57 = vld [vmem:[#allocation8 + $0x140] sm:$0xf]  ;;  %v2603_v58 = vld [vmem:[#allocation8 + $0x14c] sm:$0xf0]  ;;  %v1878_v62 = vor.u32 %v2619_v53, %v1875_v54  ;;  %v2632_v63 = vld [vmem:[#allocation9 + $0xac] sm:$0xf] }
  0x3d   :  { %597 = vmatpush.bf16.msrb.mxu3 %v1994_v19  ;;  %583 = vmatpush.bf16.msra.mxu1 %v1866_v30  ;;  %v2125_v60 = vld [vmem:[#allocation8 + $0xa0] sm:$0xf]  ;;  %v2583_v61 = vld [vmem:[#allocation8 + $0xac] sm:$0xf0]  ;;  %v1931_v0 = vld [vmem:[#allocation9 + $0xb8] sm:$0xf0]  ;;  %v2206_v1 = vor.u32 %v2603_v58, %v2205_v57 }
  0x3e   :  { %v2615_v2 = vld [vmem:[#allocation9 + $0x24] sm:$0xf]  ;;  %v1859_v3 = vld [vmem:[#allocation9 + $0x30] sm:$0xf0]  ;;  %v2126_v4 = vor.u32 %v2583_v61, %v2125_v60  ;;  %v2189_v5 = vld [vmem:[#allocation8 + $0x120] sm:$0xf]  ;;  %v1934_v7 = vor.u32 %v2632_v63, %v1931_v0 }
  0x3f   :  { %528 = vmatpush.bf16.msra.mxu0 %v1842_v40  ;;  %v2599_v6 = vld [vmem:[#allocation8 + $0x12c] sm:$0xf0]  ;;  %v2109_v8 = vld [vmem:[#allocation8 + $0x80] sm:$0xf]  ;;  %v1862_v10 = vor.u32 %v2615_v2, %v1859_v3  ;;  %v2611_v11 = vld [vmem:[#allocation9 + $0x4] sm:$0xf] }
  0x40   :  { %552 = vmatpush.bf16.msrb.mxu2 %v1910_v31  ;;  %v2579_v9 = vld [vmem:[#allocation8 + $0x8c] sm:$0xf0]  ;;  %v2628_v12 = vld [vmem:[#allocation9 + $0x8c] sm:$0xf]  ;;  %v1915_v13 = vld [vmem:[#allocation9 + $0x98] sm:$0xf0]  ;;  %v2190_v14 = vor.u32 %v2599_v6, %v2189_v5 }
  0x41   :  { %598 = vmatpush.bf16.msrb.mxu3 %v1978_v35  ;;  %584 = vmatpush.bf16.msra.mxu1 %v1850_v48  ;;  %v1843_v16 = vld [vmem:[#allocation9 + $0x10] sm:$0xf0]  ;;  %v2173_v17 = vld [vmem:[#allocation8 + $0x100] sm:$0xf]  ;;  %v2595_v18 = vld [vmem:[#allocation8 + $0x10c] sm:$0xf0]  ;;  %v2110_v19 = vor.u32 %v2579_v9, %v2109_v8  ;;  %v1918_v23 = vor.u32 %v2628_v12, %v1915_v13 }
  0x42   :  { %529 = vmatmul.bf16.vlgmr.msra.gmra.mxu0 %v3064_v55  ;;  %v2656_v20 = vld [vmem:[#allocation9 + $0x16c] sm:$0xf]  ;;  %v2027_v21 = vld [vmem:[#allocation9 + $0x178] sm:$0xf0]  ;;  %v2093_v22 = vld [vmem:[#allocation8 + $0x60] sm:$0xf]  ;;  %v1846_v27 = vor.u32 %v2611_v11, %v1843_v16  ;;  %v2174_v30 = vor.u32 %v2595_v18, %v2173_v17 }
  0x43   :  { %605 = vmatpush.bf16.msrb.mxu0 %v1966_v44  ;;  %v2575_v24 = vld [vmem:[#allocation8 + $0x6c] sm:$0xf0]  ;;  %v2165_v25 = vld [vmem:[#allocation8 + $0xe8] sm:$0xf]  ;;  %v2592_v26 = vld [vmem:[#allocation8 + $0xf4] sm:$0xf0]  ;;  %v2030_v31 = vor.u32 %v2656_v20, %v2027_v21 }
  0x44   :  { %553 = vmatpush.bf16.msrb.mxu2 %v1894_v49  ;;  %585 = vmatmul.bf16.vlgmr.msra.gmra.mxu1 %v3064_v55  ;;  %v2624_v28 = vld [vmem:[#allocation9 + $0x6c] sm:$0xf]  ;;  %v1899_v29 = vld [vmem:[#allocation9 + $0x78] sm:$0xf0]  ;;  %v2094_v33 = vor.u32 %v2575_v24, %v2093_v22  ;;  %v2166_v34 = vor.u32 %v2592_v26, %v2165_v25  ;;  %v2077_v36 = vld [vmem:[#allocation8 + $0x40] sm:$0xf] }
  0x45   :  { %885 = vmatpush.bf16.msra.mxu3 %v2158_v39  ;;  %903 = vmatpush.bf16.msrb.mxu1 %v2222_v52  ;;  %v2652_v32 = vld [vmem:[#allocation9 + $0x14c] sm:$0xf]  ;;  %v2011_v35 = vld [vmem:[#allocation9 + $0x158] sm:$0xf0]  ;;  %v2571_v37 = vld [vmem:[#allocation8 + $0x4c] sm:$0xf0]  ;;  %v1902_v38 = vor.u32 %v2624_v28, %v1899_v29 }
  0x46   :  { %2033 = vmatmul.msk.bf16.vlgmr.msrb.gmra.mxu3 %vm517_vm0, %v3058_v15  ;;  %v2149_v39 = vld [vmem:[#allocation8 + $0xc8] sm:$0xf]  ;;  %v2588_v40 = vld [vmem:[#allocation8 + $0xd4] sm:$0xf0]  ;;  %v2620_v41 = vld [vmem:[#allocation9 + $0x4c] sm:$0xf]  ;;  %v2014_v45 = vor.u32 %v2652_v32, %v2011_v35  ;;  %v2078_v46 = vor.u32 %v2571_v37, %v2077_v36 }
  0x47   :  { %606 = vmatpush.bf16.msrb.mxu0 %v1950_v59  ;;  %v1883_v42 = vld [vmem:[#allocation9 + $0x58] sm:$0xf0]  ;;  %v2559_v43 = vld [vmem:[#allocation3 + $0x4] sm:$0xf]  ;;  %v2039_v44 = vld [vmem:[#allocation3 + $0x8] sm:$0xf0]  ;;  %v2150_v47 = vor.u32 %v2588_v40, %v2149_v39 }
  0x48   :  { %554 = vmatpush.bf16.msrb.mxu2 %v1878_v62  ;;  %v2648_v48 = vld [vmem:[#allocation9 + $0x12c] sm:$0xf]  ;;  %v1995_v49 = vld [vmem:[#allocation9 + $0x138] sm:$0xf0]  ;;  %v2061_v50 = vld [vmem:[#allocation8 + $0x20] sm:$0xf]  ;;  %v1886_v51 = vor.u32 %v2620_v41, %v1883_v42 }
  0x49   :  { %886 = vmatpush.bf16.msra.mxu3 %v2142_v56  ;;  %904 = vmatpush.bf16.msrb.mxu1 %v2206_v1  ;;  %v2567_v52 = vld [vmem:[#allocation8 + $0x2c] sm:$0xf0]  ;;  %v2133_v53 = vld [vmem:[#allocation8 + $0xa8] sm:$0xf]  ;;  %v2584_v54 = vld [vmem:[#allocation8 + $0xb4] sm:$0xf0]  ;;  %v3071_v56 = vor.u32 %v2559_v43, %v2039_v44  ;;  %v1998_v59 = vor.u32 %v2648_v48, %v1995_v49 }
  0x4a   :  { %v2616_v57 = vld [vmem:[#allocation9 + $0x2c] sm:$0xf]  ;;  %v1867_v58 = vld [vmem:[#allocation9 + $0x38] sm:$0xf0]  ;;  %v2062_v62 = vor.u32 %v2567_v52, %v2061_v50  ;;  %v2134_v63 = vor.u32 %v2584_v54, %v2133_v53  ;;  %v2045_v0 = vld [vmem:[#allocation8] sm:$0xf] }
  0x4b   :  { %607 = vmatpush.bf16.msrb.mxu0 %v1934_v7  ;;  %v2644_v60 = vld [vmem:[#allocation9 + $0x10c] sm:$0xf]  ;;  %v1979_v61 = vld [vmem:[#allocation9 + $0x118] sm:$0xf0]  ;;  %v2563_v1 = vld [vmem:[#allocation8 + $0xc] sm:$0xf0]  ;;  %v1870_v3 = vor.u32 %v2616_v57, %v1867_v58 }
  0x4c   :  { %555 = vmatpush.bf16.msrb.mxu2 %v1862_v10  ;;  %v2117_v2 = vld [vmem:[#allocation8 + $0x88] sm:$0xf]  ;;  %v2589_v5 = vld [vmem:[#allocation8 + $0xe4] sm:$0xf]  ;;  %v2159_v6 = vld [vmem:[#allocation8 + $0xf0] sm:$0xf0]  ;;  %v1982_v10 = vor.u32 %v2644_v60, %v1979_v61 }
  0x4d   :  { %887 = vmatpush.bf16.msra.mxu3 %v2126_v4  ;;  %905 = vmatpush.bf16.msrb.mxu1 %v2190_v14  ;;  %v2580_v4 = vld [vmem:[#allocation8 + $0x94] sm:$0xf0]  ;;  %v2612_v7 = vld [vmem:[#allocation9 + $0xc] sm:$0xf]  ;;  %v1851_v8 = vld [vmem:[#allocation9 + $0x18] sm:$0xf0]  ;;  %v2046_v14 = vor.u32 %v2563_v1, %v2045_v0 }
  0x4e   :  { %v2605_v9 = vld [vmem:[#allocation8 + $0x164] sm:$0xf]  ;;  %v2223_v11 = vld [vmem:[#allocation8 + $0x170] sm:$0xf0]  ;;  %v2229_v12 = vld [vmem:[#allocation8 + $0x168] sm:$0xf]  ;;  %v2118_v16 = vor.u32 %v2580_v4, %v2117_v2  ;;  %v1854_v20 = vor.u32 %v2612_v7, %v1851_v8 }
  0x4f   :  { %608 = vmatpush.bf16.msrb.mxu0 %v1918_v23  ;;  %v2608_v13 = vld [vmem:[#allocation8 + $0x174] sm:$0xf0]  ;;  %v2037_v17 = vld [vmem:[#allocation3] sm:$0xf]  ;;  %v2560_v18 = vld [vmem:[#allocation3 + $0x4] sm:$0xf0]  ;;  %v2226_v23 = vor.u32 %v2605_v9, %v2223_v11 }
  0x50   :  { %556 = vmatpush.bf16.msrb.mxu2 %v1846_v27  ;;  %v2101_v21 = vld [vmem:[#allocation8 + $0x68] sm:$0xf]  ;;  %v2576_v22 = vld [vmem:[#allocation8 + $0x74] sm:$0xf0]  ;;  %v2230_v24 = vor.u32 %v2608_v13, %v2229_v12  ;;  %v2585_v25 = vld [vmem:[#allocation8 + $0xc4] sm:$0xf]  ;;  %v3075_v27 = vor.u32 %v2560_v18, %v2037_v17 }
  0x51   :  { %888 = vmatpush.bf16.msra.mxu3 %v2110_v19  ;;  %906 = vmatpush.bf16.msrb.mxu1 %v2174_v30  ;;  %v2162_v19 = vor.u32 %v2589_v5, %v2159_v6  ;;  %v2143_v26 = vld [vmem:[#allocation8 + $0xd0] sm:$0xf0]  ;;  %v2601_v28 = vld [vmem:[#allocation8 + $0x144] sm:$0xf]  ;;  %v2102_v30 = vor.u32 %v2576_v22, %v2101_v21  ;;  %v2604_v32 = vld [vmem:[#allocation8 + $0x154] sm:$0xf0] }
  0x52   :  { %v2207_v29 = vld [vmem:[#allocation8 + $0x150] sm:$0xf0]  ;;  %v2572_v35 = vld [vmem:[#allocation8 + $0x54] sm:$0xf0]  ;;  %v2581_v37 = vld [vmem:[#allocation8 + $0xa4] sm:$0xf] }
  0x53   :  { %557 = vmatmul.bf16.vlgmr.msrb.gmra.mxu2 %v3064_v55  ;;  %609 = vmatpush.bf16.msrb.mxu0 %v1902_v38  ;;  %v2210_v36 = vor.u32 %v2601_v28, %v2207_v29  ;;  %v2127_v38 = vld [vmem:[#allocation8 + $0xb0] sm:$0xf0]  ;;  %v2597_v40 = vld [vmem:[#allocation8 + $0x124] sm:$0xf]  ;;  %v2197_v43 = vld [vmem:[#allocation8 + $0x128] sm:$0xf] }
  0x54   :  { %623 = vmatpush.bf16.msra.mxu2 %v2030_v31  ;;  %2235 = vmatmul.msk.bf16.vlgmr.msrb.gmra.mxu1 %vm517_vm0, %v3071_v56  ;;  %v2213_v31 = vld [vmem:[#allocation8 + $0x148] sm:$0xf]  ;;  %v2191_v41 = vld [vmem:[#allocation8 + $0x130] sm:$0xf0]  ;;  %v2600_v44 = vld [vmem:[#allocation8 + $0x134] sm:$0xf0] }
  0x55   :  { %889 = vmatpush.bf16.msra.mxu3 %v2094_v33  ;;  %941 = vmatpush.bf16.msra.mxu1 %v2166_v34  ;;  %v2146_v33 = vor.u32 %v2585_v25, %v2143_v26  ;;  %v2085_v34 = vld [vmem:[#allocation8 + $0x48] sm:$0xf]  ;;  %v2214_v39 = vor.u32 %v2604_v32, %v2213_v31  ;;  %v2194_v48 = vor.u32 %v2597_v40, %v2191_v41  ;;  %v2577_v49 = vld [vmem:[#allocation8 + $0x84] sm:$0xf]  ;;  %v2111_v50 = vld [vmem:[#allocation8 + $0x90] sm:$0xf0] }
  0x56   :  { %v2086_v42 = vor.u32 %v2572_v35, %v2085_v34  ;;  %v2593_v52 = vld [vmem:[#allocation8 + $0x104] sm:$0xf]  ;;  %v2175_v53 = vld [vmem:[#allocation8 + $0x110] sm:$0xf0]  ;;  %v2181_v54 = vld [vmem:[#allocation8 + $0x108] sm:$0xf]  ;;  %v2114_v60 = vor.u32 %v2577_v49, %v2111_v50 }
  0x57   :  { %610 = vmatpush.bf16.msrb.mxu0 %v1886_v51  ;;  %v2198_v51 = vor.u32 %v2600_v44, %v2197_v43  ;;  %v2596_v57 = vld [vmem:[#allocation8 + $0x114] sm:$0xf0]  ;;  %v2590_v58 = vld [vmem:[#allocation8 + $0xec] sm:$0xf]  ;;  %v2053_v61 = vld [vmem:[#allocation8 + $0x8] sm:$0xf] }
  0x58   :  { %624 = vmatpush.bf16.msra.mxu2 %v2014_v45  ;;  %v2130_v45 = vor.u32 %v2581_v37, %v2127_v38  ;;  %v2095_v0 = vld [vmem:[#allocation8 + $0x70] sm:$0xf0]  ;;  %v2182_v1 = vor.u32 %v2596_v57, %v2181_v54  ;;  %v2586_v5 = vld [vmem:[#allocation8 + $0xcc] sm:$0xf]  ;;  %v2151_v6 = vld [vmem:[#allocation8 + $0xd8] sm:$0xf0] }
  0x59   :  { %890 = vmatpush.bf16.msra.mxu3 %v2078_v46  ;;  %942 = vmatpush.bf16.msra.mxu1 %v2150_v47  ;;  %v2069_v46 = vld [vmem:[#allocation8 + $0x28] sm:$0xf]  ;;  %v2568_v47 = vld [vmem:[#allocation8 + $0x34] sm:$0xf0]  ;;  %v2569_v7 = vld [vmem:[#allocation8 + $0x44] sm:$0xf]  ;;  %v2154_v9 = vor.u32 %v2586_v5, %v2151_v6 }
  0x5a   :  { %v2079_v8 = vld [vmem:[#allocation8 + $0x50] sm:$0xf0]  ;;  %v2582_v11 = vld [vmem:[#allocation8 + $0xac] sm:$0xf]  ;;  %v2135_v12 = vld [vmem:[#allocation8 + $0xb8] sm:$0xf0] }
  0x5b   :  { %611 = vmatpush.bf16.msrb.mxu0 %v1870_v3  ;;  %v2565_v13 = vld [vmem:[#allocation8 + $0x24] sm:$0xf]  ;;  %v2578_v18 = vld [vmem:[#allocation8 + $0x8c] sm:$0xf]  ;;  %v2047_v21 = vld [vmem:[#allocation8 + $0x10] sm:$0xf0] }
  0x5c   :  { %625 = vmatpush.bf16.msra.mxu2 %v1998_v59  ;;  %v2167_v59 = vld [vmem:[#allocation8 + $0xf8] sm:$0xf0]  ;;  %v2606_v22 = vld [vmem:[#allocation8 + $0x16c] sm:$0xf]  ;;  %v2297_v49 = vld [vmem:[#allocation12 + $0x70] sm:$0xf] }
  0x5d   :  { %891 = vmatpush.bf16.msra.mxu3 %v2062_v62  ;;  %943 = vmatpush.bf16.msra.mxu1 %v2134_v63  ;;  %v2564_v62 = vld [vmem:[#allocation8 + $0x14] sm:$0xf0]  ;;  %v2573_v63 = vld [vmem:[#allocation8 + $0x64] sm:$0xf]  ;;  %v2170_v2 = vor.u32 %v2590_v58, %v2167_v59  ;;  %v2574_v26 = vld [vmem:[#allocation8 + $0x6c] sm:$0xf] }
  0x5e   :  { %v2054_v3 = vor.u32 %v2564_v62, %v2053_v61  ;;  %v2098_v4 = vor.u32 %v2573_v63, %v2095_v0  ;;  %v2103_v28 = vld [vmem:[#allocation8 + $0x78] sm:$0xf0]  ;;  %v2273_v59 = vld [vmem:[#allocation12 + $0x40] sm:$0xf]  ;;  %v2425_v62 = vld [vmem:[#allocation12 + $0x170] sm:$0xf] }
  0x5f   :  { %612 = vmatpush.bf16.msrb.mxu0 %v1854_v20  ;;  %v2561_v20 = vld [vmem:[#allocation8 + $0x4] sm:$0xf]  ;;  %v2215_v31 = vld [vmem:[#allocation8 + $0x158] sm:$0xf0]  ;;  %v2106_v32 = vor.u32 %v2574_v26, %v2103_v28  ;;  %v2664_v6 = vld [vmem:[#allocation12 + $0x24] sm:$0xf0] }
  0x60   :  { %626 = vmatpush.bf16.msra.mxu2 %v1982_v10  ;;  %v2082_v10 = vor.u32 %v2569_v7, %v2079_v8  ;;  %v2050_v25 = vor.u32 %v2561_v20, %v2047_v21  ;;  %v2087_v34 = vld [vmem:[#allocation8 + $0x58] sm:$0xf0]  ;;  %v2417_v0 = vld [vmem:[#allocation12 + $0x160] sm:$0xf]  ;;  %v2409_v8 = vld [vmem:[#allocation12 + $0x150] sm:$0xf] }
  0x61   :  { %892 = vmatpush.bf16.msra.mxu3 %v2046_v14  ;;  %944 = vmatpush.bf16.msra.mxu1 %v2118_v16  ;;  %v2063_v14 = vld [vmem:[#allocation8 + $0x30] sm:$0xf0]  ;;  %v2138_v16 = vor.u32 %v2582_v11, %v2135_v12  ;;  %v2199_v37 = vld [vmem:[#allocation8 + $0x138] sm:$0xf0]  ;;  %v2257_v5 = vld [vmem:[#allocation12 + $0x20] sm:$0xf] }
  0x62   :  { %613 = vmatmul.bf16.vlgmr.msrb.gmra.mxu0 %v3064_v55  ;;  %v2070_v55 = vor.u32 %v2568_v47, %v2069_v46  ;;  %v2066_v17 = vor.u32 %v2565_v13, %v2063_v14  ;;  %v2071_v40 = vld [vmem:[#allocation8 + $0x38] sm:$0xf0]  ;;  %v2258_v7 = vor.u32 %v2664_v6, %v2257_v5  ;;  %v2249_v11 = vld [vmem:[#allocation12 + $0x10] sm:$0xf]  ;;  %v2401_v14 = vld [vmem:[#allocation12 + $0x140] sm:$0xf] }
  0x63   :  { %931 = vmatpush.bf16.msra.mxu0 %v2226_v23  ;;  %2034 = vmatmul.msk.bf16.vlgmr.msra.gmra.mxu2 %vm517_vm0, %v3058_v15  ;;  %v2178_v15 = vor.u32 %v2593_v52, %v2175_v53  ;;  %v2231_v23 = vld [vmem:[#allocation8 + $0x178] sm:$0xf0]  ;;  %v2672_v53 = vld [vmem:[#allocation12 + $0x64] sm:$0xf0]  ;;  %v2673_v28 = vld [vmem:[#allocation12 + $0x74] sm:$0xf] }
  0x64   :  { %913 = vmatpush.bf16.msrb.mxu2 %v2162_v19  ;;  %893 = vmatmul.bf16.vlgmr.msra.gmra.mxu3 %v3075_v27  ;;  %v2119_v19 = vld [vmem:[#allocation8 + $0x98] sm:$0xf0]  ;;  %v2234_v29 = vor.u32 %v2606_v22, %v2231_v23  ;;  %v2361_v23 = vld [vmem:[#allocation12 + $0xf0] sm:$0xf] }
  0x65   :  { %959 = vmatpush.bf16.msrb.mxu3 %v2230_v24  ;;  %945 = vmatpush.bf16.msra.mxu1 %v2102_v30  ;;  %v2122_v24 = vor.u32 %v2578_v18, %v2119_v19  ;;  %v2602_v30 = vld [vmem:[#allocation8 + $0x14c] sm:$0xf]  ;;  %v2183_v43 = vld [vmem:[#allocation8 + $0x118] sm:$0xf0]  ;;  %v2241_v18 = vld [vmem:[#allocation12] sm:$0xf] }
  0x66   :  { %v2218_v35 = vor.u32 %v2602_v30, %v2215_v31  ;;  %v2055_v46 = vld [vmem:[#allocation8 + $0x18] sm:$0xf0]  ;;  %v2660_v19 = vld [vmem:[#allocation12 + $0x4] sm:$0xf0]  ;;  %v2393_v31 = vld [vmem:[#allocation12 + $0x130] sm:$0xf] }
  0x67   :  { %932 = vmatpush.bf16.msra.mxu0 %v2210_v36  ;;  %v2598_v36 = vld [vmem:[#allocation8 + $0x12c] sm:$0xf]  ;;  %v2674_v50 = vld [vmem:[#allocation12 + $0x74] sm:$0xf0]  ;;  %v2242_v22 = vor.u32 %v2660_v19, %v2241_v18  ;;  %v2329_v6 = vld [vmem:[#allocation12 + $0xb0] sm:$0xf] }
  0x68   :  { %914 = vmatpush.bf16.msrb.mxu2 %v2146_v33  ;;  %v2570_v33 = vld [vmem:[#allocation8 + $0x4c] sm:$0xf]  ;;  %v2202_v41 = vor.u32 %v2598_v36, %v2199_v37  ;;  %v2298_v52 = vor.u32 %v2674_v50, %v2297_v49  ;;  %v2670_v57 = vld [vmem:[#allocation12 + $0x54] sm:$0xf0]  ;;  %v2671_v36 = vld [vmem:[#allocation12 + $0x64] sm:$0xf] }
  0x69   :  { %960 = vmatpush.bf16.msrb.mxu3 %v2214_v39  ;;  %946 = vmatpush.bf16.msra.mxu1 %v2086_v42  ;;  %v2090_v38 = vor.u32 %v2570_v33, %v2087_v34  ;;  %v2566_v39 = vld [vmem:[#allocation8 + $0x2c] sm:$0xf]  ;;  %v2666_v63 = vld [vmem:[#allocation12 + $0x34] sm:$0xf0]  ;;  %v2353_v34 = vld [vmem:[#allocation12 + $0xe0] sm:$0xf] }
  0x6a   :  { %v2594_v42 = vld [vmem:[#allocation8 + $0x10c] sm:$0xf]  ;;  %v2074_v44 = vor.u32 %v2566_v39, %v2071_v40  ;;  %v2662_v12 = vld [vmem:[#allocation12 + $0x14] sm:$0xf0]  ;;  %v2385_v39 = vld [vmem:[#allocation12 + $0x120] sm:$0xf] }
  0x6b   :  { %933 = vmatpush.bf16.msra.mxu0 %v2194_v48  ;;  %v2186_v47 = vor.u32 %v2594_v42, %v2183_v43  ;;  %v2250_v13 = vor.u32 %v2662_v12, %v2249_v11  ;;  %v2696_v40 = vld [vmem:[#allocation12 + $0x124] sm:$0xf0]  ;;  %v2345_v43 = vld [vmem:[#allocation12 + $0xd0] sm:$0xf]  ;;  %v2694_v49 = vld [vmem:[#allocation12 + $0x114] sm:$0xf0] }
  0x6c   :  { %915 = vmatpush.bf16.msrb.mxu2 %v2130_v45  ;;  %v2562_v45 = vld [vmem:[#allocation8 + $0xc] sm:$0xf]  ;;  %v2386_v42 = vor.u32 %v2696_v40, %v2385_v39  ;;  %v2481_v12 = vld [vmem:[#allocation12 + $0x1e0] sm:$0xf]  ;;  %v2313_v39 = vld [vmem:[#allocation12 + $0x90] sm:$0xf] }
  0x6d   :  { %961 = vmatpush.bf16.msrb.mxu3 %v2198_v51  ;;  %947 = vmatpush.bf16.msra.mxu1 %v2070_v55  ;;  %v2058_v48 = vor.u32 %v2562_v45, %v2055_v46  ;;  %v2289_v51 = vld [vmem:[#allocation12 + $0x60] sm:$0xf]  ;;  %v2281_v55 = vld [vmem:[#allocation12 + $0x50] sm:$0xf]  ;;  %v2669_v45 = vld [vmem:[#allocation12 + $0x54] sm:$0xf] }
  0x6e   :  { %v2290_v54 = vor.u32 %v2672_v53, %v2289_v51  ;;  %v2282_v58 = vor.u32 %v2670_v57, %v2281_v55  ;;  %v2337_v55 = vld [vmem:[#allocation12 + $0xc0] sm:$0xf]  ;;  %v2684_v57 = vld [vmem:[#allocation12 + $0xc4] sm:$0xf0]  ;;  %v2678_v40 = vld [vmem:[#allocation12 + $0x94] sm:$0xf0] }
  0x6f   :  { %934 = vmatpush.bf16.msra.mxu0 %v2178_v15  ;;  %v2265_v15 = vld [vmem:[#allocation12 + $0x30] sm:$0xf] }
  0x70   :  { %916 = vmatpush.bf16.msrb.mxu2 %v2114_v60  ;;  %v2668_v60 = vld [vmem:[#allocation12 + $0x44] sm:$0xf0] }
  0x71   :  { %962 = vmatpush.bf16.msrb.mxu3 %v2182_v1  ;;  %948 = vmatpush.bf16.msra.mxu1 %v2054_v3  ;;  %v2274_v61 = vor.u32 %v2668_v60, %v2273_v59  ;;  %v2704_v1 = vld [vmem:[#allocation12 + $0x164] sm:$0xf0]  ;;  %v2338_v60 = vor.u32 %v2684_v57, %v2337_v55  ;;  %v2659_v57 = vld [vmem:[#allocation12 + $0x4] sm:$0xf] }
  0x72   :  { %2236 = vmatmul.msk.bf16.vlgmr.msra.gmra.mxu0 %vm517_vm0, %v3071_v56  ;;  %v2418_v3 = vor.u32 %v2704_v1, %v2417_v0  ;;  %v2722_v0 = vld [vmem:[#allocation12 + $0x1f4] sm:$0xf0]  ;;  %v2705_v1 = vld [vmem:[#allocation12 + $0x174] sm:$0xf]  ;;  %v2676_v55 = vld [vmem:[#allocation12 + $0x84] sm:$0xf0] }
  0x73   :  { %969 = vmatpush.bf16.msrb.mxu0 %v2170_v2  ;;  %v2266_v2 = vor.u32 %v2666_v63, %v2265_v15  ;;  %v2489_v63 = vld [vmem:[#allocation12 + $0x1f0] sm:$0xf] }
  0x74   :  { %917 = vmatpush.bf16.msrb.mxu2 %v2098_v4  ;;  %949 = vmatmul.bf16.vlgmr.msra.gmra.mxu1 %v3075_v27 }
  0x75   :  { %2237 = vmatmul.msk.bf16.vlgmr.msrb.gmra.mxu3 %vm517_vm0, %v3071_v56 }
  0x76   :  { %1476 = vmatpush.bf16.msra.mxu3 %v2298_v52 }
  0x77   :  { %970 = vmatpush.bf16.msrb.mxu0 %v2154_v9  ;;  %v2702_v9 = vld [vmem:[#allocation12 + $0x154] sm:$0xf0] }
  0x78   :  { %918 = vmatpush.bf16.msrb.mxu2 %v2082_v10  ;;  %v2410_v10 = vor.u32 %v2702_v9, %v2409_v8  ;;  %v2665_v8 = vld [vmem:[#allocation12 + $0x34] sm:$0xf] }
  0x7a   :  { %1477 = vmatpush.bf16.msra.mxu3 %v2290_v54 }
  0x7b   :  { %971 = vmatpush.bf16.msrb.mxu0 %v2138_v16  ;;  %v2700_v16 = vld [vmem:[#allocation12 + $0x144] sm:$0xf0] }
  0x7c   :  { %919 = vmatpush.bf16.msrb.mxu2 %v2066_v17  ;;  %v2402_v17 = vor.u32 %v2700_v16, %v2401_v14  ;;  %v2703_v14 = vld [vmem:[#allocation12 + $0x164] sm:$0xf] }
  0x7e   :  { %1478 = vmatpush.bf16.msra.mxu3 %v2282_v58  ;;  %v2667_v58 = vld [vmem:[#allocation12 + $0x44] sm:$0xf] }
  0x7f   :  { %972 = vmatpush.bf16.msrb.mxu0 %v2122_v24  ;;  %v2690_v24 = vld [vmem:[#allocation12 + $0xf4] sm:$0xf0] }
  0x80   :  { %920 = vmatpush.bf16.msrb.mxu2 %v2050_v25  ;;  %v2362_v26 = vor.u32 %v2690_v24, %v2361_v23  ;;  %v2321_v23 = vld [vmem:[#allocation12 + $0xa0] sm:$0xf]  ;;  %v2680_v24 = vld [vmem:[#allocation12 + $0xa4] sm:$0xf0] }
  0x82   :  { %1479 = vmatpush.bf16.msra.mxu3 %v2274_v61  ;;  %1490 = vmatpush.bf16.msrb.mxu1 %v2362_v26  ;;  %v2275_v61 = vld [vmem:[#allocation12 + $0x48] sm:$0xf0]  ;;  %v2663_v26 = vld [vmem:[#allocation12 + $0x24] sm:$0xf] }
  0x83   :  { %921 = vmatmul.bf16.vlgmr.msrb.gmra.mxu2 %v3075_v27  ;;  %973 = vmatpush.bf16.msrb.mxu0 %v2106_v32  ;;  %v2698_v32 = vld [vmem:[#allocation12 + $0x134] sm:$0xf0]  ;;  %v2278_v15 = vor.u32 %v2667_v58, %v2275_v61  ;;  %v2243_v61 = vld [vmem:[#allocation12 + $0x8] sm:$0xf0] }
  0x84   :  { %987 = vmatpush.bf16.msra.mxu2 %v2234_v29  ;;  %v2299_v29 = vld [vmem:[#allocation12 + $0x78] sm:$0xf0]  ;;  %v2394_v33 = vor.u32 %v2698_v32, %v2393_v31  ;;  %v2473_v32 = vld [vmem:[#allocation12 + $0x1d0] sm:$0xf] }
  0x85   :  { %v2302_v30 = vor.u32 %v2673_v28, %v2299_v29  ;;  %v2322_v29 = vor.u32 %v2680_v24, %v2321_v23  ;;  %v2387_v24 = vld [vmem:[#allocation12 + $0x128] sm:$0xf0] }
  0x86   :  { %1480 = vmatpush.bf16.msra.mxu3 %v2266_v2  ;;  %v2490_v2 = vor.u32 %v2722_v0, %v2489_v63  ;;  %v2246_v0 = vor.u32 %v2659_v57, %v2243_v61  ;;  %v2371_v57 = vld [vmem:[#allocation12 + $0x108] sm:$0xf0] }
  0x87   :  { %974 = vmatpush.bf16.msrb.mxu0 %v2090_v38  ;;  %v2291_v38 = vld [vmem:[#allocation12 + $0x68] sm:$0xf0] }
  0x88   :  { %988 = vmatpush.bf16.msra.mxu2 %v2218_v35  ;;  %v2688_v35 = vld [vmem:[#allocation12 + $0xe4] sm:$0xf0] }
  0x89   :  { %v2354_v37 = vor.u32 %v2688_v35, %v2353_v34  ;;  %v2701_v34 = vld [vmem:[#allocation12 + $0x154] sm:$0xf] }
  0x8a   :  { %1481 = vmatpush.bf16.msra.mxu3 %v2258_v7  ;;  %v2682_v7 = vld [vmem:[#allocation12 + $0xb4] sm:$0xf0] }
  0x8b   :  { %975 = vmatpush.bf16.msrb.mxu0 %v2074_v44  ;;  %1491 = vmatpush.bf16.msrb.mxu1 %v2354_v37  ;;  %v2686_v44 = vld [vmem:[#allocation12 + $0xd4] sm:$0xf0]  ;;  %v2330_v9 = vor.u32 %v2682_v7, %v2329_v6  ;;  %v2411_v37 = vld [vmem:[#allocation12 + $0x158] sm:$0xf0] }
  0x8c   :  { %989 = vmatpush.bf16.msra.mxu2 %v2202_v41  ;;  %v2294_v41 = vor.u32 %v2671_v36, %v2291_v38  ;;  %v2346_v46 = vor.u32 %v2686_v44, %v2345_v43  ;;  %v2414_v38 = vor.u32 %v2701_v34, %v2411_v37  ;;  %v2251_v43 = vld [vmem:[#allocation12 + $0x18] sm:$0xf0]  ;;  %v2710_v34 = vld [vmem:[#allocation12 + $0x194] sm:$0xf0] }
  0x8e   :  { %1482 = vmatpush.bf16.msra.mxu3 %v2250_v13  ;;  %v2720_v13 = vld [vmem:[#allocation12 + $0x1e4] sm:$0xf0] }
  0x8f   :  { %976 = vmatpush.bf16.msrb.mxu0 %v2058_v48  ;;  %v2377_v48 = vld [vmem:[#allocation12 + $0x110] sm:$0xf]  ;;  %1492 = vmatpush.bf16.msrb.mxu1 %v2346_v46  ;;  %v2482_v16 = vor.u32 %v2720_v13, %v2481_v12  ;;  %v2716_v46 = vld [vmem:[#allocation12 + $0x1c4] sm:$0xf0]  ;;  %v2687_v12 = vld [vmem:[#allocation12 + $0xe4] sm:$0xf] }
  0x90   :  { %990 = vmatpush.bf16.msra.mxu2 %v2186_v47  ;;  %v2283_v47 = vld [vmem:[#allocation12 + $0x58] sm:$0xf0]  ;;  %v2378_v53 = vor.u32 %v2694_v49, %v2377_v48  ;;  %v2403_v49 = vld [vmem:[#allocation12 + $0x148] sm:$0xf0] }
  0x91   :  { %v2286_v52 = vor.u32 %v2669_v45, %v2283_v47  ;;  %v2465_v45 = vld [vmem:[#allocation12 + $0x1c0] sm:$0xf]  ;;  %v2699_v47 = vld [vmem:[#allocation12 + $0x144] sm:$0xf]  ;;  %v2355_v13 = vld [vmem:[#allocation12 + $0xe8] sm:$0xf0] }
  0x92   :  { %977 = vmatmul.bf16.vlgmr.msrb.gmra.mxu0 %v3075_v27  ;;  %v2706_v27 = vld [vmem:[#allocation12 + $0x174] sm:$0xf0]  ;;  %1483 = vmatpush.bf16.msra.mxu3 %v2242_v22  ;;  %v2466_v48 = vor.u32 %v2716_v46, %v2465_v45  ;;  %v2339_v46 = vld [vmem:[#allocation12 + $0xc8] sm:$0xf0] }
  0x93   :  { %2238 = vmatmul.msk.bf16.vlgmr.msra.gmra.mxu2 %vm517_vm0, %v3071_v56  ;;  %v2426_v56 = vor.u32 %v2706_v27, %v2425_v62  ;;  %v2369_v62 = vld [vmem:[#allocation12 + $0x100] sm:$0xf]  ;;  %v2692_v27 = vld [vmem:[#allocation12 + $0x104] sm:$0xf0]  ;;  %1493 = vmatpush.bf16.msrb.mxu1 %v2338_v60 }
  0x94   :  { %1518 = vmatpush.bf16.msra.mxu0 %v2490_v2  ;;  %v2457_v2 = vld [vmem:[#allocation12 + $0x1b0] sm:$0xf] }
  0x95   :  { %1504 = vmatpush.bf16.msrb.mxu2 %v2426_v56  ;;  %v2370_v56 = vor.u32 %v2692_v27, %v2369_v62  ;;  %v2689_v62 = vld [vmem:[#allocation12 + $0xf4] sm:$0xf]  ;;  %v2363_v27 = vld [vmem:[#allocation12 + $0xf8] sm:$0xf0] }
  0x96   :  { %1532 = vmatpush.bf16.msrb.mxu3 %v2302_v30  ;;  %v2259_v30 = vld [vmem:[#allocation12 + $0x28] sm:$0xf0] }
  0x97   :  { %1494 = vmatpush.bf16.msrb.mxu1 %v2330_v9  ;;  %v2262_v31 = vor.u32 %v2663_v26, %v2259_v30 }
  0x98   :  { %1519 = vmatpush.bf16.msra.mxu0 %v2482_v16  ;;  %v2449_v16 = vld [vmem:[#allocation12 + $0x1a0] sm:$0xf] }
  0x99   :  { %1505 = vmatpush.bf16.msrb.mxu2 %v2418_v3  ;;  %v2427_v3 = vld [vmem:[#allocation12 + $0x178] sm:$0xf0] }
  0x9a   :  { %1533 = vmatpush.bf16.msrb.mxu3 %v2294_v41  ;;  %v2430_v5 = vor.u32 %v2705_v1, %v2427_v3  ;;  %v2661_v41 = vld [vmem:[#allocation12 + $0x14] sm:$0xf]  ;;  %v2366_v1 = vor.u32 %v2689_v62, %v2363_v27  ;;  %v2714_v3 = vld [vmem:[#allocation12 + $0x1b4] sm:$0xf0] }
  0x9b   :  { %1495 = vmatpush.bf16.msrb.mxu1 %v2322_v29  ;;  %v2254_v44 = vor.u32 %v2661_v41, %v2251_v43 }
  0x9d   :  { %1506 = vmatpush.bf16.msrb.mxu2 %v2410_v10  ;;  %v2267_v10 = vld [vmem:[#allocation12 + $0x38] sm:$0xf0] }
  0x9e   :  { %1534 = vmatpush.bf16.msrb.mxu3 %v2286_v52  ;;  %v2270_v11 = vor.u32 %v2665_v8, %v2267_v10  ;;  %v2406_v52 = vor.u32 %v2699_v47, %v2403_v49  ;;  %v2395_v8 = vld [vmem:[#allocation12 + $0x138] sm:$0xf0]  ;;  %v2708_v49 = vld [vmem:[#allocation12 + $0x184] sm:$0xf0] }
  0xa1   :  { %1507 = vmatpush.bf16.msrb.mxu2 %v2402_v17  ;;  %v2419_v17 = vld [vmem:[#allocation12 + $0x168] sm:$0xf0] }
  0xa2   :  { %1535 = vmatpush.bf16.msrb.mxu3 %v2278_v15  ;;  %v2422_v22 = vor.u32 %v2703_v14, %v2419_v17  ;;  %v2358_v14 = vor.u32 %v2687_v12, %v2355_v13  ;;  %v2712_v17 = vld [vmem:[#allocation12 + $0x1a4] sm:$0xf0]  ;;  %v2323_v12 = vld [vmem:[#allocation12 + $0xa8] sm:$0xf0] }
  0xa3   :  { %v2450_v23 = vor.u32 %v2712_v17, %v2449_v16 }
  0xa5   :  { %1508 = vmatpush.bf16.msrb.mxu2 %v2394_v33  ;;  %v2718_v33 = vld [vmem:[#allocation12 + $0x1d4] sm:$0xf0] }
  0xa6   :  { %1536 = vmatpush.bf16.msrb.mxu3 %v2270_v11  ;;  %v2474_v36 = vor.u32 %v2718_v33, %v2473_v32  ;;  %v2347_v32 = vld [vmem:[#allocation12 + $0xd8] sm:$0xf0]  ;;  %v2441_v33 = vld [vmem:[#allocation12 + $0x190] sm:$0xf] }
  0xa8   :  { %1520 = vmatpush.bf16.msra.mxu0 %v2474_v36 }
  0xa9   :  { %1509 = vmatpush.bf16.msrb.mxu2 %v2386_v42  ;;  %v2314_v42 = vor.u32 %v2678_v40, %v2313_v39  ;;  %v2693_v39 = vld [vmem:[#allocation12 + $0x114] sm:$0xf]  ;;  %v2379_v40 = vld [vmem:[#allocation12 + $0x118] sm:$0xf0] }
  0xaa   :  { %1537 = vmatpush.bf16.msrb.mxu3 %v2262_v31 }
  0xab   :  { %1496 = vmatpush.bf16.msrb.mxu1 %v2314_v42  ;;  %v2382_v42 = vor.u32 %v2693_v39, %v2379_v40  ;;  %v2307_v40 = vld [vmem:[#allocation12 + $0x88] sm:$0xf0] }
  0xac   :  { %1521 = vmatpush.bf16.msra.mxu0 %v2466_v48  ;;  %v2433_v48 = vld [vmem:[#allocation12 + $0x180] sm:$0xf] }
  0xad   :  { %1510 = vmatpush.bf16.msrb.mxu2 %v2378_v53  ;;  %v2305_v53 = vld [vmem:[#allocation12 + $0x80] sm:$0xf] }
  0xae   :  { %1538 = vmatpush.bf16.msrb.mxu3 %v2254_v44  ;;  %v2306_v60 = vor.u32 %v2676_v55, %v2305_v53  ;;  %v2434_v55 = vor.u32 %v2708_v49, %v2433_v48 }
  0xb0   :  { %1497 = vmatpush.bf16.msrb.mxu1 %v2306_v60  ;;  %v2491_v60 = vld [vmem:[#allocation12 + $0x1f8] sm:$0xf0] }
  0xb1   :  { %1511 = vmatpush.bf16.msrb.mxu2 %v2370_v56  ;;  %v3116_v56 = vld [vmem:[#allocation11] sm:$0xf] }
  0xb2   :  { %1539 = vmatpush.bf16.msrb.mxu3 %v2246_v0  ;;  %v1026_v11 = vperm.slane %v3116_v56, 0 }
  0xb4   :  { %1546 = vmatpush.bf16.msra.mxu1 %v2366_v1  ;;  %v2331_v1 = vld [vmem:[#allocation12 + $0xb8] sm:$0xf0] }
  0xb5   :  { %1560 = vmatpush.bf16.msra.mxu2 %v2430_v5 }
  0xb8   :  { %1547 = vmatpush.bf16.msra.mxu1 %v2358_v14 }
  0xb9   :  { %v3090_v4 = vpop.f32.mrf.mxu3  ;;  %v3096_v25 = vpop.f32.mrf.mxu2  ;;  %1561 = vmatpush.bf16.msra.mxu2 %v2422_v22  ;;  %v2695_v22 = vld [vmem:[#allocation12 + $0x124] sm:$0xf] }
  0xba   :  { %v2390_v26 = vor.u32 %v2695_v22, %v2387_v24  ;;  %v2475_v24 = vld [vmem:[#allocation12 + $0x1d8] sm:$0xf0] }
  0xbd   :  { %1562 = vmatpush.bf16.msra.mxu2 %v2414_v38  ;;  %v2442_v38 = vor.u32 %v2710_v34, %v2441_v33 }
  0xbf   :  { %v3104_v59 = vpop.f32.mrf.mxu0 }
  0xc0   :  { %v545_v58 = vadd.f32 %v3096_v25, %v3104_v59  ;;  %v2458_v25 = vor.u32 %v2714_v3, %v2457_v2  ;;  %v2697_v59 = vld [vmem:[#allocation12 + $0x134] sm:$0xf] }
  0xc1   :  { %v3092_v20 = vpop.f32.mrf.mxu3  ;;  %v3094_v21 = vpop.f32.mrf.mxu1  ;;  %1563 = vmatpush.bf16.msra.mxu2 %v2406_v52  ;;  %v2398_v9 = vor.u32 %v2697_v59, %v2395_v8  ;;  %v2691_v52 = vld [vmem:[#allocation12 + $0x104] sm:$0xf]  ;;  %v2483_v8 = vld [vmem:[#allocation12 + $0x1e8] sm:$0xf0] }
  0xc2   :  { %v3102_v54 = vpop.f32.mrf.mxu2  ;;  %1522 = vmatpush.bf16.msra.mxu0 %v2458_v25  ;;  %v2374_v61 = vor.u32 %v2691_v52, %v2371_v57  ;;  %v2719_v59 = vld [vmem:[#allocation12 + $0x1e4] sm:$0xf] }
  0xc3   :  { %v2711_v57 = vld [vmem:[#allocation12 + $0x1a4] sm:$0xf] }
  0xc5   :  { %1564 = vmatpush.bf16.msra.mxu2 %v2398_v9 }
  0xc6   :  { %1523 = vmatpush.bf16.msra.mxu0 %v2450_v23  ;;  %v2717_v23 = vld [vmem:[#allocation12 + $0x1d4] sm:$0xf] }
  0xc7   :  { %v3112_v35 = vpop.f32.mrf.mxu0 }
  0xc8   :  { %v547_v29 = vadd.f32 %v3102_v54, %v3112_v35  ;;  %v2683_v35 = vld [vmem:[#allocation12 + $0xc4] sm:$0xf] }
  0xc9   :  { %v3098_v50 = vpop.f32.mrf.mxu3  ;;  %v3100_v51 = vpop.f32.mrf.mxu1  ;;  %1565 = vmatpush.bf16.msra.mxu2 %v2390_v26  ;;  %v2342_v47 = vor.u32 %v2683_v35, %v2339_v46  ;;  %v2713_v35 = vld [vmem:[#allocation12 + $0x1b4] sm:$0xf] }
  0xca   :  { %1524 = vmatpush.bf16.msra.mxu0 %v2442_v38  ;;  %v601_v27 = vadd.f32 %v3098_v50, %v3094_v21  ;;  %v1028_v21 = vperm.slane %v3116_v56, 2  ;;  %v2679_v50 = vld [vmem:[#allocation12 + $0xa4] sm:$0xf] }
  0xcb   :  { %v2326_v14 = vor.u32 %v2679_v50, %v2323_v12 }
  0xcd   :  { %1566 = vmatpush.bf16.msra.mxu2 %v2382_v42 }
  0xce   :  { %1525 = vmatpush.bf16.msra.mxu0 %v2434_v55 }
  0xd1   :  { %v3106_v18 = vpop.f32.mrf.mxu3  ;;  %v3108_v19 = vpop.f32.mrf.mxu1  ;;  %1567 = vmatpush.bf16.msra.mxu2 %v2374_v61  ;;  %v2709_v61 = vld [vmem:[#allocation12 + $0x194] sm:$0xf] }
  0xd2   :  { %v603_v16 = vadd.f32 %v3106_v18, %v3100_v51  ;;  %v2675_v18 = vld [vmem:[#allocation12 + $0x84] sm:$0xf] }
  0xd3   :  { %v2310_v42 = vor.u32 %v2675_v18, %v2307_v40  ;;  %v2723_v18 = vld [vmem:[#allocation14] sm:$0xff] }
  0xd4   :  { %v2735_v40 = vld [vmem:[#allocation14 + $0x60] sm:$0xff] }
  0xd6   :  { %v3110_v28 = vpop.f32.mrf.mxu2 }
  0xd9   :  { %v910_v63 = vpop.f32.mrf.mxu1 }
  0xde   :  { %v3118_v5 = vpop.f32.mrf.mxu2 }
  0xdf   :  { %v3120_v7 = vpop.f32.mrf.mxu0 }
  0xe6   :  { %v3126_v44 = vpop.f32.mrf.mxu2 }
  0xe7   :  { %v894_v15 = vpop.f32.mrf.mxu3  ;;  %v3128_v54 = vpop.f32.mrf.mxu0 }
  0xe8   :  { %v895_v6 = vadd.f32 %v894_v15, %v545_v58  ;;  %v2721_v58 = vld [vmem:[#allocation12 + $0x1f4] sm:$0xf] }
  0xe9   :  { %v2494_v62 = vor.u32 %v2721_v58, %v2491_v60  ;;  %v2451_v58 = vld [vmem:[#allocation12 + $0x1a8] sm:$0xf0] }
  0xea   :  { %v909_v10 = vadd.f32 %v3108_v19, %v895_v6  ;;  %v2685_v19 = vld [vmem:[#allocation12 + $0xd4] sm:$0xf] }
  0xeb   :  { %v2350_v37 = vor.u32 %v2685_v19, %v2347_v32  ;;  %1574 = vmatpush.bf16.msrb.mxu0 %v2494_v62  ;;  %v2677_v19 = vld [vmem:[#allocation12 + $0x94] sm:$0xf]  ;;  %v2443_v62 = vld [vmem:[#allocation12 + $0x198] sm:$0xf0] }
  0xec   :  { %v1034_v30 = vadd.f32 %v1026_v11, %v909_v10  ;;  %v2486_v10 = vor.u32 %v2719_v59, %v2483_v8 }
  0xed   :  { %1548 = vmatpush.bf16.msra.mxu1 %v2350_v37  ;;  %v2467_v37 = vld [vmem:[#allocation12 + $0x1c8] sm:$0xf0] }
  0xee   :  { %v1050_v43 = vmul.f32 0.2, %v1034_v30  ;;  %vm1042_vm1 = vcmp.gt.f32.partialorder %v1034_v30, 0.0  ;;  %v3135_v17 = vpop.f32.mrf.mxu2 }
  0xef   :  { %v896_v31 = vpop.f32.mrf.mxu3  ;;  %1575 = vmatpush.bf16.msrb.mxu0 %v2486_v10  ;;  %v936_v22 = vpop.f32.mrf.mxu0 }
  0xf0   :  { %v897_v36 = vadd.f32 %v896_v31, %v547_v29  ;;  %v1058_v3 = vsel %vm1042_vm1, %v1034_v30, %v1050_v43  ;;  %v2478_v30 = vor.u32 %v2717_v23, %v2475_v24  ;;  %v2315_v31 = vld [vmem:[#allocation12 + $0x98] sm:$0xf0] }
  0xf1   :  { %v950_v41 = vpop.f32.mrf.mxu1  ;;  %1549 = vmatpush.bf16.msra.mxu1 %v2342_v47  ;;  %v2318_v33 = vor.u32 %v2677_v19, %v2315_v31  ;;  %v2459_v47 = vld [vmem:[#allocation12 + $0x1b8] sm:$0xf0] }
  0xf2   :  { %v911_v45 = vadd.f32 %v910_v63, %v897_v36  ;;  %v2681_v63 = vld [vmem:[#allocation12 + $0xb4] sm:$0xf]  ;;  %v951_v2 = vadd.f32 %v950_v41, %v601_v27  ;;  %v2715_v36 = vld [vmem:[#allocation12 + $0x1c4] sm:$0xf]  ;;  %v573_v41 = vadd.f32 %v3090_v4, %v3110_v28  ;;  %v1027_v4 = vperm.slane %v3116_v56, 1 }
  0xf3   :  { %v2334_v25 = vor.u32 %v2681_v63, %v2331_v1  ;;  %1576 = vmatpush.bf16.msrb.mxu0 %v2478_v30  ;;  %v2470_v38 = vor.u32 %v2715_v36, %v2467_v37  ;;  %v2454_v28 = vor.u32 %v2711_v57, %v2451_v58  ;;  %v575_v27 = vadd.f32 %v3092_v20, %v3118_v5  ;;  %v2738_v36 = vld [vmem:[#allocation14 + $0x78] sm:$0xff]  ;;  %v2725_v37 = vld [vmem:[#allocation14 + $0x10] sm:$0xff] }
  0xf4   :  { %v1038_v53 = vadd.f32 %v1026_v11, %v911_v45  ;;  %v2446_v63 = vor.u32 %v2709_v61, %v2443_v62 }
  0xf5   :  { %1550 = vmatpush.bf16.msra.mxu1 %v2334_v25 }
  0xf6   :  { %vm1046_vm2 = vcmp.gt.f32.partialorder %v1038_v53, 0.0  ;;  %v1054_v15 = vmul.f32 0.2, %v1038_v53 }
  0xf7   :  { %1577 = vmatpush.bf16.msrb.mxu0 %v2470_v38  ;;  %v938_v52 = vpop.f32.mrf.mxu0  ;;  %v2737_v38 = vld [vmem:[#allocation14 + $0x70] sm:$0xff] }
  0xf8   :  { %v964_v0 = vpop.f32.mrf.mxu3  ;;  %v1062_v6 = vsel %vm1046_vm2, %v1038_v53, %v1054_v15  ;;  %v2462_v53 = vor.u32 %v2713_v35, %v2459_v47  ;;  %v1150_v35 = vld [vmem:[%s3165_s6] sm:$0x3] }
  0xf9   :  { %v1082_v9 = vpack.c.bf16 %v1062_v6, %v1058_v3  ;;  %v965_v11 = vadd.f32 %v964_v0, %v951_v2  ;;  %v952_v13 = vpop.f32.mrf.mxu1  ;;  %1551 = vmatpush.bf16.msra.mxu1 %v2326_v14  ;;  %v2707_v2 = vld [vmem:[#allocation12 + $0x184] sm:$0xf]  ;;  %v2435_v3 = vld [vmem:[#allocation12 + $0x188] sm:$0xf0]  ;;  %v1029_v14 = vperm.slane %v3116_v56, 3  ;;  %v2730_v56 = vld [vmem:[#allocation14 + $0x38] sm:$0xff] }
  0xfa   :  { %v953_v29 = vadd.f32 %v952_v13, %v603_v16  ;;  %v2438_v59 = vor.u32 %v2707_v2, %v2435_v3 }
  0xfb   :  { %1484 = vmatmul.bf16.vlgmr.msra.gmra.mxu3 %v1082_v9  ;;  %v1036_v26 = vadd.f32 %v1028_v21, %v965_v11  ;;  %1578 = vmatpush.bf16.msrb.mxu0 %v2462_v53  ;;  %v629_v11 = vadd.f32 %v3126_v44, %v3120_v7 }
  0xfc   :  { %1734 = vmatpush.bf16.msra.mxu3 %v2730_v56 }
  0xfd   :  { %v1052_v39 = vmul.f32 0.2, %v1036_v26  ;;  %1552 = vmatpush.bf16.msra.mxu1 %v2318_v33  ;;  %vm1044_vm3 = vcmp.gt.f32.partialorder %v1036_v26, 0.0  ;;  %v2729_v33 = vld [vmem:[#allocation14 + $0x30] sm:$0xff] }
  0xff   :  { %v1060_v48 = vsel %vm1044_vm3, %v1036_v26, %v1052_v39  ;;  %1579 = vmatpush.bf16.msrb.mxu0 %v2454_v28  ;;  %v2724_v39 = vld [vmem:[#allocation14 + $0x8] sm:$0xff] }
 0x100   :  { %v966_v32 = vpop.f32.mrf.mxu3  ;;  %1735 = vmatpush.bf16.msra.mxu3 %v2729_v33 }
 0x101   :  { %v967_v34 = vadd.f32 %v966_v32, %v953_v29  ;;  %1553 = vmatpush.bf16.msra.mxu1 %v2310_v42 }
 0x103   :  { %v1040_v51 = vadd.f32 %v1028_v21, %v967_v34  ;;  %1580 = vmatpush.bf16.msrb.mxu0 %v2446_v63  ;;  %v2726_v34 = vld [vmem:[#allocation14 + $0x18] sm:$0xff] }
 0x105   :  { %vm1048_vm4 = vcmp.gt.f32.partialorder %v1040_v51, 0.0  ;;  %v1056_v43 = vmul.f32 0.2, %v1040_v51 }
 0x106   :  { %v922_v45 = vpop.f32.mrf.mxu2 }
 0x107   :  { %v923_v46 = vadd.f32 %v922_v45, %v573_v41  ;;  %v1064_v49 = vsel %vm1048_vm4, %v1040_v51, %v1056_v43  ;;  %1581 = vmatpush.bf16.msrb.mxu0 %v2438_v59  ;;  %v2736_v51 = vld [vmem:[#allocation14 + $0x68] sm:$0xff]  ;;  %v2734_v41 = vld [vmem:[#allocation14 + $0x58] sm:$0xff]  ;;  %v2733_v45 = vld [vmem:[#allocation14 + $0x50] sm:$0xff] }
 0x108   :  { %v1084_v55 = vpack.c.bf16 %v1064_v49, %v1060_v48  ;;  %v1152_v48 = vperm.slane %v1150_v35, 0 }
 0x109   :  { %v937_v60 = vadd.f32 %v936_v22, %v923_v46  ;;  %v631_v22 = vadd.f32 %v3135_v17, %v3128_v54  ;;  %v2728_v54 = vld [vmem:[#allocation14 + $0x28] sm:$0xff]  ;;  %v2727_v17 = vld [vmem:[#allocation14 + $0x20] sm:$0xff] }
 0x10a   :  { %1512 = vmatmul.bf16.vlgmr.msrb.gmra.mxu2 %v1084_v55  ;;  %1736 = vmatpush.bf16.msra.mxu3 %v2728_v54  ;;  %v2732_v46 = vld [vmem:[#allocation14 + $0x48] sm:$0xff] }
 0x10b   :  { %1540 = vmatmul.bf16.vlgmr.msrb.gmra.mxu3 %v1082_v9  ;;  %v1035_v0 = vadd.f32 %v1027_v4, %v937_v60 }
 0x10d   :  { %v1051_v8 = vmul.f32 0.2, %v1035_v0  ;;  %vm1043_vm5 = vcmp.gt.f32.partialorder %v1035_v0, 0.0 }
 0x10e   :  { %v924_v15 = vpop.f32.mrf.mxu2  ;;  %1737 = vmatpush.bf16.msra.mxu3 %v2727_v17 }
 0x10f   :  { %v925_v1 = vadd.f32 %v924_v15, %v575_v27  ;;  %v978_v6 = vpop.f32.mrf.mxu0  ;;  %v1059_v21 = vsel %vm1043_vm5, %v1035_v0, %v1051_v8 }
 0x110   :  { %v979_v9 = vadd.f32 %v978_v6, %v629_v11 }
 0x111   :  { %v939_v25 = vadd.f32 %v938_v52, %v925_v1  ;;  %v2731_v52 = vld [vmem:[#allocation14 + $0x40] sm:$0xff]  ;;  %v1153_v1 = vperm.slane %v1150_v35, 1 }
 0x112   :  { %1738 = vmatpush.bf16.msra.mxu3 %v2726_v34 }
 0x113   :  { %v1039_v10 = vadd.f32 %v1027_v4, %v939_v25 }
 0x115   :  { %vm1047_vm6 = vcmp.gt.f32.partialorder %v1039_v10, 0.0  ;;  %v1055_v20 = vmul.f32 0.2, %v1039_v10 }
 0x116   :  { %v992_v5 = vpop.f32.mrf.mxu2  ;;  %1739 = vmatpush.bf16.msra.mxu3 %v2725_v37 }
 0x117   :  { %v1063_v50 = vsel %vm1047_vm6, %v1039_v10, %v1055_v20  ;;  %v993_v13 = vadd.f32 %v992_v5, %v979_v9  ;;  %v980_v16 = vpop.f32.mrf.mxu0 }
 0x118   :  { %v1083_v12 = vpack.c.bf16 %v1063_v50, %v1059_v21  ;;  %v981_v24 = vadd.f32 %v980_v16, %v631_v22 }
 0x119   :  { %v1037_v23 = vadd.f32 %v1029_v14, %v993_v13 }
 0x11a   :  { %1498 = vmatmul.bf16.vlgmr.msrb.gmra.mxu1 %v1083_v12  ;;  %1568 = vmatmul.bf16.vlgmr.msra.gmra.mxu2 %v1084_v55 }
 0x11b   :  { %v1053_v26 = vmul.f32 0.2, %v1037_v23  ;;  %vm1045_vm7 = vcmp.gt.f32.partialorder %v1037_v23, 0.0  ;;  %1748 = vmatpush.bf16.msrb.mxu1 %v2738_v36  ;;  %1740 = vmatpush.bf16.msra.mxu3 %v2724_v39 }
 0x11d   :  { %v1061_v19 = vsel %vm1045_vm7, %v1037_v23, %v1053_v26 }
 0x11e   :  { %v994_v7 = vpop.f32.mrf.mxu2 }
 0x11f   :  { %v995_v44 = vadd.f32 %v994_v7, %v981_v24  ;;  %1749 = vmatpush.bf16.msrb.mxu1 %v2737_v38  ;;  %1741 = vmatpush.bf16.msra.mxu3 %v2723_v18 }
 0x121   :  { %v1041_v29 = vadd.f32 %v1029_v14, %v995_v44 }
 0x123   :  { %vm1049_vm8 = vcmp.gt.f32.partialorder %v1041_v29, 0.0  ;;  %v1057_v30 = vmul.f32 0.2, %v1041_v29  ;;  %1750 = vmatpush.bf16.msrb.mxu1 %v2736_v51 }
 0x125   :  { %v1065_v31 = vsel %vm1049_vm8, %v1041_v29, %v1057_v30 }
 0x126   :  { %v1085_v32 = vpack.c.bf16 %v1065_v31, %v1061_v19  ;;  %v2753_v31 = vld [vmem:[%s3167_s8] ss:$0 sm:$0xff]  ;;  %s2977_s8 = smov [#allocation15]  }
 0x127   :  { %1751 = vmatpush.bf16.msrb.mxu1 %v2735_v40  ;;  %s1812_s25 = sshll.u32 %s2977_s8, 4  ;;  %s1813_s25 = int_to_ptr.vmem [resolvable:$true] %s1812_s25 }
 0x128   :  { %1526 = vmatmul.bf16.vlgmr.msra.gmra.mxu0 %v1085_v32 }
 0x12a   :  { %1554 = vmatmul.bf16.vlgmr.msra.gmra.mxu1 %v1083_v12 }
 0x12b   :  { %1752 = vmatpush.bf16.msrb.mxu1 %v2734_v41 }
 0x12f   :  { %1753 = vmatpush.bf16.msrb.mxu1 %v2733_v45 }
 0x133   :  { %1754 = vmatpush.bf16.msrb.mxu1 %v2732_v46 }
 0x137   :  { %1755 = vmatpush.bf16.msrb.mxu1 %v2731_v52 }
 0x138   :  { %1582 = vmatmul.bf16.vlgmr.msrb.gmra.mxu0 %v1085_v32 }
 0x17e   :  { %v1485_v42 = vpop.f32.mrf.mxu3 }
 0x17f   :  { %v1486_v55 = vadd.f32 %v1485_v42, %v1152_v48 }
 0x186   :  { %v1487_v49 = vpop.f32.mrf.mxu3 }
 0x187   :  { %v1488_v60 = vadd.f32 %v1487_v49, %v1152_v48 }
 0x18d   :  { %v1513_v47 = vpop.f32.mrf.mxu2 }
 0x18e   :  { %v1541_v62 = vpop.f32.mrf.mxu3 }
 0x18f   :  { %v1542_v59 = vadd.f32 %v1541_v62, %v1153_v1 }
 0x195   :  { %v1515_v4 = vpop.f32.mrf.mxu2 }
 0x196   :  { %v1543_v11 = vpop.f32.mrf.mxu3 }
 0x197   :  { %v1499_v43 = vpop.f32.mrf.mxu1  ;;  %v1544_v50 = vadd.f32 %v1543_v11, %v1153_v1 }
 0x198   :  { %v1500_v57 = vadd.f32 %v1499_v43, %v1486_v55 }
 0x19a   :  { %v1514_v61 = vadd.f32 %v1513_v47, %v1500_v57 }
 0x19d   :  { %v1569_v25 = vpop.f32.mrf.mxu2 }
 0x19f   :  { %v1501_v53 = vpop.f32.mrf.mxu1 }
 0x1a0   :  { %v1502_v28 = vadd.f32 %v1501_v53, %v1488_v60 }
 0x1a2   :  { %v1516_v63 = vadd.f32 %v1515_v4, %v1502_v28 }
 0x1a5   :  { %v1527_v58 = vpop.f32.mrf.mxu0  ;;  %v1571_v16 = vpop.f32.mrf.mxu2 }
 0x1a6   :  { %v1528_v27 = vadd.f32 %v1527_v58, %v1514_v61 }
 0x1a7   :  { %v1555_v15 = vpop.f32.mrf.mxu1 }
 0x1a8   :  { %v1592_v2 = vmul.f32 0.2, %v1528_v27  ;;  %vm1588_vm9 = vcmp.gt.f32.partialorder %v1528_v27, 0.0  ;;  %v1556_v5 = vadd.f32 %v1555_v15, %v1542_v59 }
 0x1aa   :  { %v1596_v8 = vsel %vm1588_vm9, %v1528_v27, %v1592_v2  ;;  %v1570_v13 = vadd.f32 %v1569_v25, %v1556_v5 }
 0x1ad   :  { %v1529_v0 = vpop.f32.mrf.mxu0 }
 0x1ae   :  { %v1530_v3 = vadd.f32 %v1529_v0, %v1516_v63 }
 0x1af   :  { %v1557_v9 = vpop.f32.mrf.mxu1 }
 0x1b0   :  { %vm1590_vm10 = vcmp.gt.f32.partialorder %v1530_v3, 0.0  ;;  %v1594_v6 = vmul.f32 0.2, %v1530_v3  ;;  %v1558_v12 = vadd.f32 %v1557_v9, %v1544_v50 }
 0x1b2   :  { %v1598_v10 = vsel %vm1590_vm10, %v1530_v3, %v1594_v6  ;;  %v1572_v22 = vadd.f32 %v1571_v16, %v1558_v12 }
 0x1b3   :  { %v1600_v20 = vpack.c.bf16 %v1598_v10, %v1596_v8 }
 0x1b5   :  { %v1583_v21 = vpop.f32.mrf.mxu0  ;;  %1742 = vmatmul.bf16.vlgmr.msra.gmra.mxu3 %v1600_v20 }
 0x1b6   :  { %v1584_v14 = vadd.f32 %v1583_v21, %v1570_v13 }
 0x1b8   :  { %v1593_v24 = vmul.f32 0.2, %v1584_v14  ;;  %vm1589_vm11 = vcmp.gt.f32.partialorder %v1584_v14, 0.0 }
 0x1ba   :  { %v1597_v26 = vsel %vm1589_vm11, %v1584_v14, %v1593_v24 }
 0x1bd   :  { %v1585_v23 = vpop.f32.mrf.mxu0 }
 0x1be   :  { %v1586_v7 = vadd.f32 %v1585_v23, %v1572_v22 }
 0x1c0   :  { %vm1591_vm12 = vcmp.gt.f32.partialorder %v1586_v7, 0.0  ;;  %v1595_v44 = vmul.f32 0.2, %v1586_v7 }
 0x1c2   :  { %v1599_v29 = vsel %vm1591_vm12, %v1586_v7, %v1595_v44 }
 0x1c3   :  { %v1601_v30 = vpack.c.bf16 %v1599_v29, %v1597_v26 }
 0x1c5   :  { %1756 = vmatmul.bf16.vlgmr.msrb.gmra.mxu1 %v1601_v30 }
 0x238   :  { %v1743_v19 = vpop.f32.mrf.mxu3 }
 0x239   :  { %v1744_v32 = vadd.f32 %v2753_v31, %v1743_v19 }
 0x240   :  { %v1745_v17 = vpop.f32.mrf.mxu3 }
 0x241   :  { %v1746_v36 = vadd.f32 %v2753_v31, %v1745_v17 }
 0x242   :  { %v1757_v56 = vpop.f32.mrf.mxu1 }
 0x243   :  { %v1758_v33 = vadd.f32 %v1757_v56, %v1744_v32 }
 0x245   :  { %v1762_v54 = vand.u32 2147483647, %v1758_v33  ;;  %vm1770_vm0 = vcmp.ge.f32.partialorder %v1758_v33, 0.0 }
 0x247   :  { %v1764_v34 = vsub.f32 0.0, %v1762_v54 }
 0x249   :  { %v1766_v37 = vmul.f32 1.442695, %v1764_v34 }
 0x24a   :  { %v1759_v38 = vpop.f32.mrf.mxu1 }
 0x24b   :  { %2754 = vpow2.f32 %v1766_v37  ;;  %v1760_v39 = vadd.f32 %v1759_v38, %v1746_v36 }
 0x24d   :  { %v1763_v51 = vand.u32 2147483647, %v1760_v39  ;;  %vm1771_vm5 = vcmp.ge.f32.partialorder %v1760_v39, 0.0 }
 0x24f   :  { %v1765_v18 = vsub.f32 0.0, %v1763_v51 }
 0x251   :  { %v2755_v40 = vpop.eup %2754  ;;  %v1768_v41 = vmul.f32 1.442695, %v1765_v18 }
 0x252   :  { %v1774_v42 = vadd.f32 1.0, %v2755_v40  ;;  %v1772_v4 = vsel %vm1770_vm0, 1.0, %v2755_v40 }
 0x253   :  { %2756 = vpow2.f32 %v1768_v41 }
 0x254   :  { %2758 = vrcp.f32 %v1774_v42  ;;  %v1787_v48 = vand.u32 2147483648, %v1774_v42  ;;  %v1785_v52 = vand.u32 2147483647, %v1774_v42  ;;  %vm1781_vm14 = vweird.f32 %v1774_v42 }
 0x256   :  { %v1788_v57 = vor.u32 1.1754944e-38, %v1787_v48  ;;  %vm1786_vm1 = vcmp.eq.f32.partialorder %v1785_v52, 8.507059e+37 }
 0x259   :  { %v2757_v43 = vpop.eup %2756 }
 0x25a   :  { %v2759_v45 = vpop.eup %2758  ;;  %v1775_v35 = vadd.f32 1.0, %v2757_v43  ;;  %v1773_v3 = vsel %vm1771_vm5, 1.0, %v2757_v43 }
 0x25b   :  { %v1777_v46 = vmul.f32 %v2759_v45, %v1774_v42  ;;  %vm1782_vm13 = vweird.f32 %v2759_v45 }
 0x25c   :  { %2760 = vrcp.f32 %v1775_v35  ;;  %vm1783_vm15 = vmor %vm1781_vm14, %vm1782_vm13  ;;  %v1802_v27 = vand.u32 2147483648, %v1775_v35  ;;  %v1800_v63 = vand.u32 2147483647, %v1775_v35  ;;  %vm1796_vm3 = vweird.f32 %v1775_v35 }
 0x25d   :  { %v1778_v47 = vsub.f32 1.0, %v1777_v46 }
 0x25e   :  { %v1803_v1 = vor.u32 1.1754944e-38, %v1802_v27  ;;  %vm1801_vm6 = vcmp.eq.f32.partialorder %v1800_v63, 8.507059e+37 }
 0x25f   :  { %v1779_v49 = vmul.f32 %v2759_v45, %v1778_v47 }
 0x261   :  { %v1780_v53 = vadd.f32 %v2759_v45, %v1779_v49 }
 0x262   :  { %v2761_v55 = vpop.eup %2760 }
 0x263   :  { %v1784_v58 = vsel %vm1783_vm15, %v2759_v45, %v1780_v53  ;;  %v1792_v60 = vmul.f32 %v2761_v55, %v1775_v35  ;;  %vm1797_vm2 = vweird.f32 %v2761_v55 }
 0x264   :  { %v1789_v28 = vsel %vm1786_vm1, %v1788_v57, %v1784_v58  ;;  %vm1798_vm4 = vmor %vm1796_vm3, %vm1797_vm2 }
 0x265   :  { %v1790_v61 = vmul.f32 %v1789_v28, %v1772_v4  ;;  %v1793_v62 = vsub.f32 1.0, %v1792_v60 }
 0x267   :  { %1806 = vst [vmem:[#allocation15] sm:$0xff] %v1790_v61  ;;  %v1794_v15 = vmul.f32 %v2761_v55, %v1793_v62 }
 0x269   :  { %v1795_v0 = vadd.f32 %v2761_v55, %v1794_v15 }
 0x26b   :  { %v1799_v2 = vsel %vm1798_vm4, %v2761_v55, %v1795_v0 }
 0x26c   :  { %v1804_v6 = vsel %vm1801_vm6, %v1803_v1, %v1799_v2 }
 0x26d   :  { %v1805_v25 = vmul.f32 %v1804_v6, %v1773_v3 }
 0x26f   :  { %1807 = vst [vmem:[#allocation15 + $0x8] sm:$0xff] %v1805_v25 }
 0x270   :  { %1820 = dma.vmem_to_hbm [thread:$0]  %s1813_s25, 256, %s1815_s30, [#allocation5], %s2965_s14, %s2965_s14, %s2966_s15  }
 0x271   :  { %2962 = dma.done.wait [#allocation5], 256  }
 0x272   :  { %2963 = vsyncadd [#allocation5], 4294967040 }
 0x273   :  { %1825 = vsyncpa [#allocation4], 1 }
 0x274   :  { %1826 = vsyncpa [#allocation7], 1 }
 0x275   :  { %1827 = vsyncpa [#allocation10], 1 }
 0x276   :  { %1828 = vsyncpa [#allocation13], 1 }
 0x277   :  { %1829 = vsyncpa [#allocation5], 1 }

</bundles_post_ra>
